<compile_context>
chip_gen: v6e
topology: v6e:2x2x1
jax: 0.10.0
libtpu: 0.0.40
codegen_flags: <defaults>
</compile_context>

<pallas_src>
import jax
import jax.numpy as jnp
from jax.experimental import pallas as pl
from jax.experimental.pallas import tpu as pltpu

THETA = 0.8    # cdcconv central-difference coefficient
EPS = 1e-5     # normalization epsilon
SLOPE = 0.1    # LeakyReLU negative slope


# ----------------------------------------------------------------------------
# Pallas kernel
# ----------------------------------------------------------------------------
def make_dep_kernel(H, W, C, G):
    HW = H * W
    NH = G * HW                       # lanes per grid step (G images side by side)

    def lrelu(v):
        return jnp.where(v > 0, v, SLOPE * v)

    def kernel(x_ref, w_a_ref, w_b_ref, w_pbf_ref, w_fuse_ref, w_p1_ref, w_p2_ref,
               mask_ref, out_ref):
        x = x_ref[...]                                     # (C, NH) f32, lane-dense

        def im2col(y):
            # Shift-input-first 'SAME' 3x3 conv: roll the input for every tap along
            # the flattened HW lane axis, zero output positions whose tap crosses an
            # image boundary (mask row k), stack rows as (tap, cin), and append a
            # ones row so the conv bias rides the same MXU matmul.  Roll wraps across
            # image seams only land on masked positions, so packing several images
            # along lanes stays exact.
            n = y.shape[1]
            blocks = []
            for k in range(9):
                ky, kx = divmod(k, 3)
                off = (ky - 1) * W + (kx - 1)
                if off == 0:
                    blocks.append(y)                       # centre tap: no shift/mask
                else:
                    blocks.append(pltpu.roll(y, (-off) % n, 1) * mask_ref[k:k + 1, :n])
            blocks.append(mask_ref[9:10, :n])              # ones row -> bias column
            return jnp.concatenate(blocks, axis=0).astype(jnp.bfloat16)

        def mm(w_ref, rhs):                                # bf16 x bf16 -> f32 on MXU
            return jnp.dot(w_ref[...], rhs, preferred_element_type=jnp.float32)

        # LNM_block2: per-(sample, channel) standardization over H*W (f32).  The
        # learnable affine (gamma, beta) is folded into w_fuse host-side.
        zs = []
        for g in range(G):
            xs = x[:, g * HW:(g + 1) * HW]
            mu = jnp.mean(xs, axis=1, keepdims=True)
            var = jnp.mean((xs - mu) ** 2, axis=1, keepdims=True)
            zs.append((xs - mu) * jax.lax.rsqrt(var + EPS))
        x_z = zs[0] if G == 1 else jnp.concatenate(zs, axis=1)        # (C, NH)

        # ProcessBlock, run ONCE on [relu(x) | relu(-x)] concatenated along lanes.
        xpn = jnp.concatenate([jnp.maximum(x, 0.0), jnp.maximum(-x, 0.0)], axis=1)
        a = mm(w_a_ref, im2col(xpn))                       # (2C, 2NH): rows 0:C conv1,
        t = lrelu(a[:C])                                   #  rows C:2C cdc∘pbf_wb + b
        x_conv = lrelu(mm(w_b_ref, im2col(t)))             # (C, 2NH)
        pb = mm(w_pbf_ref, x_conv.astype(jnp.bfloat16)) + a[C:]       # (C, 2NH)

        # fuse1/fuse2 merged into one matmul; x_n negation, instance-norm affine and
        # both fuse biases are folded into w_fuse host-side.
        fuse_in = jnp.concatenate(
            [x_z, pb[:, :NH], pb[:, NH:], mask_ref[9:10, :NH]], axis=0)
        x_pn1 = mm(w_fuse_ref, fuse_in.astype(jnp.bfloat16))          # (2C, NH)

        # post: merged first 3x3 over the 2C concat, LReLU, final 3x3, LReLU.
        t1 = lrelu(mm(w_p1_ref, im2col(x_pn1)))            # (C, NH)
        t2 = lrelu(mm(w_p2_ref, im2col(t1)))               # (C, NH)

        out_ref[...] = (t2 + x).astype(out_ref.dtype)      # residual in f32

    return kernel


# ----------------------------------------------------------------------------
# Host-side weight packing (exact algebraic folds / merges), weights in bf16
# ----------------------------------------------------------------------------
def pack_params(p, C, H, W, G):
    HW = H * W

    def conv_mat(w9, bias):
        # (9, cin, cout) conv taps -> (cout, 9*cin + 1) im2col matrix (+ bias column).
        cout = w9.shape[2]
        m = jnp.transpose(w9, (2, 0, 1)).reshape(cout, -1)
        return jnp.concatenate([m, bias.reshape(cout, 1)], axis=1)

    # cdcconv folded into a plain 3x3 (centre tap -= theta * sum_k W_k), composed with
    # the ProcessBlock fuse 1x1 weight pbf_wb; its bias column carries pbf_b.
    cdc_fold = p['cdc_w'].at[4].add(-THETA * jnp.sum(p['cdc_w'], axis=0))
    cdc_fused = jnp.einsum('kab,bc->kac', cdc_fold, p['pbf_wb'])

    w_a = jnp.concatenate([conv_mat(p['pb_w1'], p['pb_b1']),
                           conv_mat(cdc_fused, p['pbf_b'])], axis=0)       # (2C, 9C+1)
    w_b = conv_mat(p['pb_w2'], p['pb_b2'])                                 # (C, 9C+1)
    w_pbf = p['pbf_wa'].T                                                  # (C, C)
    w_p1 = conv_mat(jnp.concatenate([p['post_w1a'], p['post_w1b']], axis=1),
                    p['post_b1'])                                          # (C, 18C+1)
    w_p2 = conv_mat(p['post_w2'], p['post_b2'])                            # (C, 9C+1)

    # fuse1/fuse2 merged; kernel-side input rows are [z, pb_p, pb_n, ones].  gamma
    # scales the z columns, beta folds into the bias column, and x_n = -pb_n folds
    # its sign into the third block.
    gam = p['gamma'].reshape(1, C)
    zc = jnp.zeros((C, C), jnp.float32)
    w_fuse = jnp.concatenate([
        jnp.concatenate([p['f1_wa'].T * gam, p['f1_wb'].T, zc,
                         (p['f1_wa'].T @ p['beta'] + p['f1_b']).reshape(C, 1)], axis=1),
        jnp.concatenate([p['f2_wa'].T * gam, zc, -p['f2_wb'].T,
                         (p['f2_wa'].T @ p['beta'] + p['f2_b']).reshape(C, 1)], axis=1),
    ], axis=0)                                                             # (2C, 3C+1)

    # Per-tap output-position validity masks (row 9 = ones / bias row), tiled over the
    # 2*G images that sit side by side in lanes inside the merged process block.
    pos = jnp.arange(HW)
    hh, ww = pos // W, pos % W
    rows = []
    for k in range(9):
        ky, kx = divmod(k, 3)
        valid = jnp.ones((HW,), bool)
        if ky == 0:
            valid = valid & (hh >= 1)
        if ky == 2:
            valid = valid & (hh <= H - 2)
        if kx == 0:
            valid = valid & (ww >= 1)
        if kx == 2:
            valid = valid & (ww <= W - 2)
        rows.append(valid.astype(jnp.float32))
    rows.append(jnp.ones((HW,), jnp.float32))
    mask = jnp.tile(jnp.stack(rows), (1, 2 * G))                           # (10, 2*G*HW)

    weights = tuple(w.astype(jnp.bfloat16)
                    for w in (w_a, w_b, w_pbf, w_fuse, w_p1, w_p2))
    return weights, mask


# ----------------------------------------------------------------------------
# Wrapper
# ----------------------------------------------------------------------------
def _default_samples_per_step(batch):
    """Fold the whole batch into one grid step on single-TensorCore chips (v5e/v6e);
    keep a batch-parallel grid on chips with 2 TCs (v4/v5p megacore, v7x)."""
    try:
        kind = jax.devices()[0].device_kind.lower()
    except Exception:
        return batch
    single_tc = any(s in kind for s in
                    ("v5e", "v5 lite", "v5lite", "v6e", "v6 lite", "v6lite"))
    return batch if single_tc else 1


def dep_pallas(x, p, samples_per_step=None):
    # x: (B, C, H, W) float32, NCHW exactly as the PyTorch module receives it.
    B, C, H, W = x.shape
    HW = H * W
    G = _default_samples_per_step(B) if samples_per_step is None else samples_per_step
    if G < 1 or B % G != 0:
        G = 1
    ngroups = B // G
    NH = G * HW

    weights, mask = pack_params(p, C, H, W, G)
    kernel = make_dep_kernel(H, W, C, G)

    # G images laid side by side along lanes -> every matmul / store is lane-dense.
    xg = x.reshape(ngroups, G, C, HW).transpose(0, 2, 1, 3).reshape(ngroups, C, NH)

    w_specs = [pl.BlockSpec(w.shape, lambda g: (0, 0)) for w in weights]
    grid_spec = pltpu.PrefetchScalarGridSpec(
        num_scalar_prefetch=0,
        grid=(ngroups,),
        in_specs=([pl.BlockSpec((None, C, NH), lambda g: (g, 0, 0))] + w_specs
                  + [pl.BlockSpec(mask.shape, lambda g: (0, 0))]),
        out_specs=pl.BlockSpec((None, C, NH), lambda g: (g, 0, 0)),
    )
    out = pl.pallas_call(
        kernel,
        out_shape=jax.ShapeDtypeStruct((ngroups, C, NH), jnp.float32),
        grid_spec=grid_spec,
        compiler_params=pltpu.CompilerParams(dimension_semantics=("parallel",)),
    )(xg, *weights, mask)
    return out.reshape(ngroups, C, G, HW).transpose(0, 2, 1, 3).reshape(B, C, H, W)


# ----------------------------------------------------------------------------
# Pure-JAX reference (independent: lax.conv) for correctness checking
# ----------------------------------------------------------------------------
def _conv3x3_ref(x, w9, b=None):
    w_hwio = w9.reshape(3, 3, w9.shape[1], w9.shape[2])
    y = jax.lax.conv_general_dilated(
        x, w_hwio, window_strides=(1, 1), padding='SAME',
        dimension_numbers=('NCHW', 'HWIO', 'NCHW'),
        precision=jax.lax.Precision.HIGHEST)
    if b is not None:
        y = y + b.reshape(1, -1, 1, 1)
    return y


def _conv1x1_ref(x, w, b=None):
    y = jnp.einsum('bchw,cd->bdhw', x, w, precision=jax.lax.Precision.HIGHEST)
    if b is not None:
        y = y + b.reshape(1, -1, 1, 1)
    return y


def dep_ref(x, p):
    relu = lambda v: jnp.maximum(v, 0.0)
    lrelu = lambda v: jnp.where(v > 0, v, SLOPE * v)

    mean = jnp.mean(x, axis=(2, 3), keepdims=True)
    var = jnp.mean((x - mean) ** 2, axis=(2, 3), keepdims=True)
    x_norm = ((x - mean) / jnp.sqrt(var + EPS)) * p['gamma'].reshape(1, -1, 1, 1) \
        + p['beta'].reshape(1, -1, 1, 1)

    def pblock(y):
        t = lrelu(_conv3x3_ref(y, p['pb_w1'], p['pb_b1']))
        x_conv = lrelu(_conv3x3_ref(t, p['pb_w2'], p['pb_b2']))
        out_normal = _conv3x3_ref(y, p['cdc_w'])
        kd = jnp.sum(p['cdc_w'], axis=0)
        x_cdc = out_normal - THETA * _conv1x1_ref(y, kd)
        return _conv1x1_ref(x_conv, p['pbf_wa']) + _conv1x1_ref(x_cdc, p['pbf_wb'], p['pbf_b'])

    x_p = pblock(relu(x))
    x_n = -pblock(relu(-x))
    x_p1 = _conv1x1_ref(x_norm, p['f1_wa']) + _conv1x1_ref(x_p, p['f1_wb'], p['f1_b'])
    x_n1 = _conv1x1_ref(x_norm, p['f2_wa']) + _conv1x1_ref(x_n, p['f2_wb'], p['f2_b'])
    t = lrelu(_conv3x3_ref(x_p1, p['post_w1a'])
              + _conv3x3_ref(x_n1, p['post_w1b'], p['post_b1']))
    t2 = lrelu(_conv3x3_ref(t, p['post_w2'], p['post_b2']))
    return t2 + x


# ----------------------------------------------------------------------------
# Deterministic parameter init (synthetic weights; no checkpoint loading)
# ----------------------------------------------------------------------------
def init_params(key, C):
    keys = iter(jax.random.split(key, 32))

    def w(shape, scale=0.1):
        return scale * jax.random.normal(next(keys), shape, jnp.float32)

    return dict(
        gamma=1.0 + 0.1 * jax.random.normal(next(keys), (C,), jnp.float32),
        beta=0.1 * jax.random.normal(next(keys), (C,), jnp.float32),
        pb_w1=w((9, C, C)), pb_b1=w((C,), 0.02),
        pb_w2=w((9, C, C)), pb_b2=w((C,), 0.02),
        cdc_w=w((9, C, C)),
        pbf_wa=w((C, C)), pbf_wb=w((C, C)), pbf_b=w((C,), 0.02),
        f1_wa=w((C, C)), f1_wb=w((C, C)), f1_b=w((C,), 0.02),
        f2_wa=w((C, C)), f2_wb=w((C, C)), f2_b=w((C,), 0.02),
        post_w1a=w((9, C, C)), post_w1b=w((9, C, C)), post_b1=w((C,), 0.02),
        post_w2=w((9, C, C)), post_b2=w((C,), 0.02),
    )


if __name__ == "__main__":
    B, C, H, W = 2, 4, 16, 16   # PyTorch NCHW input (2, 4, 16, 16)

    key = jax.random.PRNGKey(0)
    kx, kp = jax.random.split(key)
    x = jax.random.normal(kx, (B, C, H, W), jnp.float32)
    params = init_params(kp, C)

    out = jax.block_until_ready(dep_pallas(x, params))
    ref = dep_ref(x, params)
    err = float(jnp.max(jnp.abs(out - ref)))

    assert out.shape == (B, C, H, W)
    assert err < 2e-2, f"max abs err vs reference: {err}"

    print("KERNEL_OK")
</pallas_src>

<mosaic_0001>
module attributes {stable_mosaic.version = 11 : i64} {
  func.func @kernel(%arg0: i32, %arg1: memref<1x4x256xf32, #tpu.memory_space<vmem>>, %arg2: memref<8x37xbf16, #tpu.memory_space<vmem>>, %arg3: memref<4x37xbf16, #tpu.memory_space<vmem>>, %arg4: memref<4x4xbf16, #tpu.memory_space<vmem>>, %arg5: memref<8x13xbf16, #tpu.memory_space<vmem>>, %arg6: memref<4x73xbf16, #tpu.memory_space<vmem>>, %arg7: memref<4x37xbf16, #tpu.memory_space<vmem>>, %arg8: memref<10x512xf32, #tpu.memory_space<vmem>>, %arg9: memref<1x4x256xf32, #tpu.memory_space<vmem>>) attributes {dimension_semantics = [#tpu.dimension_semantics<parallel>], iteration_bounds = array<i64: 2>, scalar_prefetch = 0 : i64, scratch_operands = 0 : i64, tpu.core_type = #tpu.core_type<tc>, window_params = [{transform_indices = @transform_0, window_bounds = array<i64: 1, 4, 256>}, {pipeline_mode = #tpu.pipeline_mode<synchronous>, transform_indices = @transform_1, window_bounds = array<i64: 8, 37>}, {pipeline_mode = #tpu.pipeline_mode<synchronous>, transform_indices = @transform_2, window_bounds = array<i64: 4, 37>}, {pipeline_mode = #tpu.pipeline_mode<synchronous>, transform_indices = @transform_3, window_bounds = array<i64: 4, 4>}, {pipeline_mode = #tpu.pipeline_mode<synchronous>, transform_indices = @transform_4, window_bounds = array<i64: 8, 13>}, {pipeline_mode = #tpu.pipeline_mode<synchronous>, transform_indices = @transform_5, window_bounds = array<i64: 4, 73>}, {pipeline_mode = #tpu.pipeline_mode<synchronous>, transform_indices = @transform_6, window_bounds = array<i64: 4, 37>}, {pipeline_mode = #tpu.pipeline_mode<synchronous>, transform_indices = @transform_7, window_bounds = array<i64: 10, 512>}, {transform_indices = @transform_8, window_bounds = array<i64: 1, 4, 256>}]} {
    %c0 = arith.constant 0 : index
    %c0_0 = arith.constant 0 : index
    %c0_1 = arith.constant 0 : index
    %0 = vector.load %arg1[%c0, %c0_0, %c0_1] : memref<1x4x256xf32, #tpu.memory_space<vmem>>, vector<1x4x256xf32>
    %1 = vector.shape_cast %0 : vector<1x4x256xf32> to vector<4x256xf32>
    %cst = arith.constant dense<0.000000e+00> : vector<4xf32>
    %2 = vector.multi_reduction <add>, %1, %cst [1] : vector<4x256xf32> to vector<4xf32>
    %3 = vector.shape_cast %2 : vector<4xf32> to vector<4x1xf32>
    %cst_2 = arith.constant 2.560000e+02 : f32
    %4 = vector.broadcast %cst_2 : f32 to vector<4x1xf32>
    %5 = arith.divf %3, %4 : vector<4x1xf32>
    %6 = vector.broadcast %5 : vector<4x1xf32> to vector<4x256xf32>
    %7 = arith.subf %1, %6 : vector<4x256xf32>
    %8 = arith.mulf %7, %7 : vector<4x256xf32>
    %cst_3 = arith.constant dense<0.000000e+00> : vector<4xf32>
    %9 = vector.multi_reduction <add>, %8, %cst_3 [1] : vector<4x256xf32> to vector<4xf32>
    %10 = vector.shape_cast %9 : vector<4xf32> to vector<4x1xf32>
    %cst_4 = arith.constant 2.560000e+02 : f32
    %11 = vector.broadcast %cst_4 : f32 to vector<4x1xf32>
    %12 = arith.divf %10, %11 : vector<4x1xf32>
    %13 = vector.broadcast %5 : vector<4x1xf32> to vector<4x256xf32>
    %14 = arith.subf %1, %13 : vector<4x256xf32>
    %cst_5 = arith.constant 9.99999974E-6 : f32
    %15 = vector.broadcast %cst_5 : f32 to vector<4x1xf32>
    %16 = arith.addf %12, %15 : vector<4x1xf32>
    %17 = math.rsqrt %16 : vector<4x1xf32>
    %18 = vector.broadcast %17 : vector<4x1xf32> to vector<4x256xf32>
    %19 = arith.mulf %14, %18 : vector<4x256xf32>
    %cst_6 = arith.constant 0.000000e+00 : f32
    %20 = vector.broadcast %cst_6 : f32 to vector<4x256xf32>
    %21 = arith.maximumf %1, %20 : vector<4x256xf32>
    %cst_7 = arith.constant 0.000000e+00 : f32
    %22 = vector.broadcast %cst_7 : f32 to vector<4x256xf32>
    %23 = arith.subf %22, %1 : vector<4x256xf32>
    %cst_8 = arith.constant 0.000000e+00 : f32
    %24 = vector.broadcast %cst_8 : f32 to vector<4x256xf32>
    %25 = arith.maximumf %23, %24 : vector<4x256xf32>
    %26 = tpu.concatenate %21, %25 in 1 : vector<4x256xf32>, vector<4x256xf32> -> vector<4x512xf32>
    %c17_i32 = arith.constant 17 : i32
    %27 = tpu.dynamic_rotate %26 by %c17_i32 dim 1 : vector<4x512xf32>, i32 -> vector<4x512xf32>
    %c0_9 = arith.constant 0 : index
    %c0_10 = arith.constant 0 : index
    %28 = vector.load %arg8[%c0_9, %c0_10] : memref<10x512xf32, #tpu.memory_space<vmem>>, vector<1x512xf32>
    %29 = vector.broadcast %28 : vector<1x512xf32> to vector<4x512xf32>
    %30 = arith.mulf %27, %29 : vector<4x512xf32>
    %c16_i32 = arith.constant 16 : i32
    %31 = tpu.dynamic_rotate %26 by %c16_i32 dim 1 : vector<4x512xf32>, i32 -> vector<4x512xf32>
    %c1 = arith.constant 1 : index
    %c0_11 = arith.constant 0 : index
    %32 = vector.load %arg8[%c1, %c0_11] : memref<10x512xf32, #tpu.memory_space<vmem>>, vector<1x512xf32>
    %33 = vector.broadcast %32 : vector<1x512xf32> to vector<4x512xf32>
    %34 = arith.mulf %31, %33 : vector<4x512xf32>
    %c15_i32 = arith.constant 15 : i32
    %35 = tpu.dynamic_rotate %26 by %c15_i32 dim 1 : vector<4x512xf32>, i32 -> vector<4x512xf32>
    %c2 = arith.constant 2 : index
    %c0_12 = arith.constant 0 : index
    %36 = vector.load %arg8[%c2, %c0_12] : memref<10x512xf32, #tpu.memory_space<vmem>>, vector<1x512xf32>
    %37 = vector.broadcast %36 : vector<1x512xf32> to vector<4x512xf32>
    %38 = arith.mulf %35, %37 : vector<4x512xf32>
    %c1_i32 = arith.constant 1 : i32
    %39 = tpu.dynamic_rotate %26 by %c1_i32 dim 1 : vector<4x512xf32>, i32 -> vector<4x512xf32>
    %c3 = arith.constant 3 : index
    %c0_13 = arith.constant 0 : index
    %40 = vector.load %arg8[%c3, %c0_13] : memref<10x512xf32, #tpu.memory_space<vmem>>, vector<1x512xf32>
    %41 = vector.broadcast %40 : vector<1x512xf32> to vector<4x512xf32>
    %42 = arith.mulf %39, %41 : vector<4x512xf32>
    %c511_i32 = arith.constant 511 : i32
    %43 = tpu.dynamic_rotate %26 by %c511_i32 dim 1 : vector<4x512xf32>, i32 -> vector<4x512xf32>
    %c5 = arith.constant 5 : index
    %c0_14 = arith.constant 0 : index
    %44 = vector.load %arg8[%c5, %c0_14] : memref<10x512xf32, #tpu.memory_space<vmem>>, vector<1x512xf32>
    %45 = vector.broadcast %44 : vector<1x512xf32> to vector<4x512xf32>
    %46 = arith.mulf %43, %45 : vector<4x512xf32>
    %c497_i32 = arith.constant 497 : i32
    %47 = tpu.dynamic_rotate %26 by %c497_i32 dim 1 : vector<4x512xf32>, i32 -> vector<4x512xf32>
    %c6 = arith.constant 6 : index
    %c0_15 = arith.constant 0 : index
    %48 = vector.load %arg8[%c6, %c0_15] : memref<10x512xf32, #tpu.memory_space<vmem>>, vector<1x512xf32>
    %49 = vector.broadcast %48 : vector<1x512xf32> to vector<4x512xf32>
    %50 = arith.mulf %47, %49 : vector<4x512xf32>
    %c496_i32 = arith.constant 496 : i32
    %51 = tpu.dynamic_rotate %26 by %c496_i32 dim 1 : vector<4x512xf32>, i32 -> vector<4x512xf32>
    %c7 = arith.constant 7 : index
    %c0_16 = arith.constant 0 : index
    %52 = vector.load %arg8[%c7, %c0_16] : memref<10x512xf32, #tpu.memory_space<vmem>>, vector<1x512xf32>
    %53 = vector.broadcast %52 : vector<1x512xf32> to vector<4x512xf32>
    %54 = arith.mulf %51, %53 : vector<4x512xf32>
    %c495_i32 = arith.constant 495 : i32
    %55 = tpu.dynamic_rotate %26 by %c495_i32 dim 1 : vector<4x512xf32>, i32 -> vector<4x512xf32>
    %c8 = arith.constant 8 : index
    %c0_17 = arith.constant 0 : index
    %56 = vector.load %arg8[%c8, %c0_17] : memref<10x512xf32, #tpu.memory_space<vmem>>, vector<1x512xf32>
    %57 = vector.broadcast %56 : vector<1x512xf32> to vector<4x512xf32>
    %58 = arith.mulf %55, %57 : vector<4x512xf32>
    %c9 = arith.constant 9 : index
    %c0_18 = arith.constant 0 : index
    %59 = vector.load %arg8[%c9, %c0_18] : memref<10x512xf32, #tpu.memory_space<vmem>>, vector<1x512xf32>
    %60 = tpu.concatenate %30, %34, %38, %42, %26, %46, %50, %54, %58, %59 in 0 : vector<4x512xf32>, vector<4x512xf32>, vector<4x512xf32>, vector<4x512xf32>, vector<4x512xf32>, vector<4x512xf32>, vector<4x512xf32>, vector<4x512xf32>, vector<4x512xf32>, vector<1x512xf32> -> vector<37x512xf32>
    %61 = arith.truncf %60 : vector<37x512xf32> to vector<37x512xbf16>
    %c0_19 = arith.constant 0 : index
    %c0_20 = arith.constant 0 : index
    %62 = vector.load %arg2[%c0_19, %c0_20] : memref<8x37xbf16, #tpu.memory_space<vmem>>, vector<8x37xbf16>
    %cst_21 = arith.constant dense<0.000000e+00> : vector<8x512xf32>
    %63 = tpu.matmul %62, %61, %cst_21 {dimension_numbers = #tpu.dot_dimension_numbers<[1], [0], [0], [1], [0, 0, 1, 1], [], []>} : vector<8x37xbf16>, vector<37x512xbf16>, vector<8x512xf32> -> vector<8x512xf32>
    %64 = vector.extract_strided_slice %63 {offsets = [0, 0], sizes = [4, 512], strides = [1, 1]} : vector<8x512xf32> to vector<4x512xf32>
    %cst_22 = arith.constant 0.000000e+00 : f32
    %65 = vector.broadcast %cst_22 : f32 to vector<4x512xf32>
    %66 = arith.cmpf ogt, %64, %65 : vector<4x512xf32>
    %cst_23 = arith.constant 1.000000e-01 : f32
    %67 = vector.broadcast %cst_23 : f32 to vector<4x512xf32>
    %68 = arith.mulf %67, %64 : vector<4x512xf32>
    %69 = arith.select %66, %64, %68 : vector<4x512xi1>, vector<4x512xf32>
    %c17_i32_24 = arith.constant 17 : i32
    %70 = tpu.dynamic_rotate %69 by %c17_i32_24 dim 1 : vector<4x512xf32>, i32 -> vector<4x512xf32>
    %c0_25 = arith.constant 0 : index
    %c0_26 = arith.constant 0 : index
    %71 = vector.load %arg8[%c0_25, %c0_26] : memref<10x512xf32, #tpu.memory_space<vmem>>, vector<1x512xf32>
    %72 = vector.broadcast %71 : vector<1x512xf32> to vector<4x512xf32>
    %73 = arith.mulf %70, %72 : vector<4x512xf32>
    %c16_i32_27 = arith.constant 16 : i32
    %74 = tpu.dynamic_rotate %69 by %c16_i32_27 dim 1 : vector<4x512xf32>, i32 -> vector<4x512xf32>
    %c1_28 = arith.constant 1 : index
    %c0_29 = arith.constant 0 : index
    %75 = vector.load %arg8[%c1_28, %c0_29] : memref<10x512xf32, #tpu.memory_space<vmem>>, vector<1x512xf32>
    %76 = vector.broadcast %75 : vector<1x512xf32> to vector<4x512xf32>
    %77 = arith.mulf %74, %76 : vector<4x512xf32>
    %c15_i32_30 = arith.constant 15 : i32
    %78 = tpu.dynamic_rotate %69 by %c15_i32_30 dim 1 : vector<4x512xf32>, i32 -> vector<4x512xf32>
    %c2_31 = arith.constant 2 : index
    %c0_32 = arith.constant 0 : index
    %79 = vector.load %arg8[%c2_31, %c0_32] : memref<10x512xf32, #tpu.memory_space<vmem>>, vector<1x512xf32>
    %80 = vector.broadcast %79 : vector<1x512xf32> to vector<4x512xf32>
    %81 = arith.mulf %78, %80 : vector<4x512xf32>
    %c1_i32_33 = arith.constant 1 : i32
    %82 = tpu.dynamic_rotate %69 by %c1_i32_33 dim 1 : vector<4x512xf32>, i32 -> vector<4x512xf32>
    %c3_34 = arith.constant 3 : index
    %c0_35 = arith.constant 0 : index
    %83 = vector.load %arg8[%c3_34, %c0_35] : memref<10x512xf32, #tpu.memory_space<vmem>>, vector<1x512xf32>
    %84 = vector.broadcast %83 : vector<1x512xf32> to vector<4x512xf32>
    %85 = arith.mulf %82, %84 : vector<4x512xf32>
    %c511_i32_36 = arith.constant 511 : i32
    %86 = tpu.dynamic_rotate %69 by %c511_i32_36 dim 1 : vector<4x512xf32>, i32 -> vector<4x512xf32>
    %c5_37 = arith.constant 5 : index
    %c0_38 = arith.constant 0 : index
    %87 = vector.load %arg8[%c5_37, %c0_38] : memref<10x512xf32, #tpu.memory_space<vmem>>, vector<1x512xf32>
    %88 = vector.broadcast %87 : vector<1x512xf32> to vector<4x512xf32>
    %89 = arith.mulf %86, %88 : vector<4x512xf32>
    %c497_i32_39 = arith.constant 497 : i32
    %90 = tpu.dynamic_rotate %69 by %c497_i32_39 dim 1 : vector<4x512xf32>, i32 -> vector<4x512xf32>
    %c6_40 = arith.constant 6 : index
    %c0_41 = arith.constant 0 : index
    %91 = vector.load %arg8[%c6_40, %c0_41] : memref<10x512xf32, #tpu.memory_space<vmem>>, vector<1x512xf32>
    %92 = vector.broadcast %91 : vector<1x512xf32> to vector<4x512xf32>
    %93 = arith.mulf %90, %92 : vector<4x512xf32>
    %c496_i32_42 = arith.constant 496 : i32
    %94 = tpu.dynamic_rotate %69 by %c496_i32_42 dim 1 : vector<4x512xf32>, i32 -> vector<4x512xf32>
    %c7_43 = arith.constant 7 : index
    %c0_44 = arith.constant 0 : index
    %95 = vector.load %arg8[%c7_43, %c0_44] : memref<10x512xf32, #tpu.memory_space<vmem>>, vector<1x512xf32>
    %96 = vector.broadcast %95 : vector<1x512xf32> to vector<4x512xf32>
    %97 = arith.mulf %94, %96 : vector<4x512xf32>
    %c495_i32_45 = arith.constant 495 : i32
    %98 = tpu.dynamic_rotate %69 by %c495_i32_45 dim 1 : vector<4x512xf32>, i32 -> vector<4x512xf32>
    %c8_46 = arith.constant 8 : index
    %c0_47 = arith.constant 0 : index
    %99 = vector.load %arg8[%c8_46, %c0_47] : memref<10x512xf32, #tpu.memory_space<vmem>>, vector<1x512xf32>
    %100 = vector.broadcast %99 : vector<1x512xf32> to vector<4x512xf32>
    %101 = arith.mulf %98, %100 : vector<4x512xf32>
    %c9_48 = arith.constant 9 : index
    %c0_49 = arith.constant 0 : index
    %102 = vector.load %arg8[%c9_48, %c0_49] : memref<10x512xf32, #tpu.memory_space<vmem>>, vector<1x512xf32>
    %103 = tpu.concatenate %73, %77, %81, %85, %69, %89, %93, %97, %101, %102 in 0 : vector<4x512xf32>, vector<4x512xf32>, vector<4x512xf32>, vector<4x512xf32>, vector<4x512xf32>, vector<4x512xf32>, vector<4x512xf32>, vector<4x512xf32>, vector<4x512xf32>, vector<1x512xf32> -> vector<37x512xf32>
    %104 = arith.truncf %103 : vector<37x512xf32> to vector<37x512xbf16>
    %c0_50 = arith.constant 0 : index
    %c0_51 = arith.constant 0 : index
    %105 = vector.load %arg3[%c0_50, %c0_51] : memref<4x37xbf16, #tpu.memory_space<vmem>>, vector<4x37xbf16>
    %cst_52 = arith.constant dense<0.000000e+00> : vector<4x512xf32>
    %106 = tpu.matmul %105, %104, %cst_52 {dimension_numbers = #tpu.dot_dimension_numbers<[1], [0], [0], [1], [0, 0, 1, 1], [], []>} : vector<4x37xbf16>, vector<37x512xbf16>, vector<4x512xf32> -> vector<4x512xf32>
    %cst_53 = arith.constant 0.000000e+00 : f32
    %107 = vector.broadcast %cst_53 : f32 to vector<4x512xf32>
    %108 = arith.cmpf ogt, %106, %107 : vector<4x512xf32>
    %cst_54 = arith.constant 1.000000e-01 : f32
    %109 = vector.broadcast %cst_54 : f32 to vector<4x512xf32>
    %110 = arith.mulf %109, %106 : vector<4x512xf32>
    %111 = arith.select %108, %106, %110 : vector<4x512xi1>, vector<4x512xf32>
    %112 = arith.truncf %111 : vector<4x512xf32> to vector<4x512xbf16>
    %c0_55 = arith.constant 0 : index
    %c0_56 = arith.constant 0 : index
    %113 = vector.load %arg4[%c0_55, %c0_56] : memref<4x4xbf16, #tpu.memory_space<vmem>>, vector<4x4xbf16>
    %cst_57 = arith.constant dense<0.000000e+00> : vector<4x512xf32>
    %114 = tpu.matmul %113, %112, %cst_57 {dimension_numbers = #tpu.dot_dimension_numbers<[1], [0], [0], [1], [0, 0, 1, 1], [], []>} : vector<4x4xbf16>, vector<4x512xbf16>, vector<4x512xf32> -> vector<4x512xf32>
    %115 = vector.extract_strided_slice %63 {offsets = [4, 0], sizes = [4, 512], strides = [1, 1]} : vector<8x512xf32> to vector<4x512xf32>
    %116 = arith.addf %114, %115 : vector<4x512xf32>
    %117 = vector.extract_strided_slice %116 {offsets = [0, 0], sizes = [4, 256], strides = [1, 1]} : vector<4x512xf32> to vector<4x256xf32>
    %118 = vector.extract_strided_slice %116 {offsets = [0, 256], sizes = [4, 256], strides = [1, 1]} : vector<4x512xf32> to vector<4x256xf32>
    %c9_58 = arith.constant 9 : index
    %c0_59 = arith.constant 0 : index
    %119 = vector.load %arg8[%c9_58, %c0_59] : memref<10x512xf32, #tpu.memory_space<vmem>>, vector<1x256xf32>
    %120 = tpu.concatenate %19, %117, %118, %119 in 0 : vector<4x256xf32>, vector<4x256xf32>, vector<4x256xf32>, vector<1x256xf32> -> vector<13x256xf32>
    %121 = arith.truncf %120 : vector<13x256xf32> to vector<13x256xbf16>
    %c0_60 = arith.constant 0 : index
    %c0_61 = arith.constant 0 : index
    %122 = vector.load %arg5[%c0_60, %c0_61] : memref<8x13xbf16, #tpu.memory_space<vmem>>, vector<8x13xbf16>
    %cst_62 = arith.constant dense<0.000000e+00> : vector<8x256xf32>
    %123 = tpu.matmul %122, %121, %cst_62 {dimension_numbers = #tpu.dot_dimension_numbers<[1], [0], [0], [1], [0, 0, 1, 1], [], []>} : vector<8x13xbf16>, vector<13x256xbf16>, vector<8x256xf32> -> vector<8x256xf32>
    %c17_i32_63 = arith.constant 17 : i32
    %124 = tpu.dynamic_rotate %123 by %c17_i32_63 dim 1 : vector<8x256xf32>, i32 -> vector<8x256xf32>
    %c0_64 = arith.constant 0 : index
    %c0_65 = arith.constant 0 : index
    %125 = vector.load %arg8[%c0_64, %c0_65] : memref<10x512xf32, #tpu.memory_space<vmem>>, vector<1x256xf32>
    %126 = vector.broadcast %125 : vector<1x256xf32> to vector<8x256xf32>
    %127 = arith.mulf %124, %126 : vector<8x256xf32>
    %c16_i32_66 = arith.constant 16 : i32
    %128 = tpu.dynamic_rotate %123 by %c16_i32_66 dim 1 : vector<8x256xf32>, i32 -> vector<8x256xf32>
    %c1_67 = arith.constant 1 : index
    %c0_68 = arith.constant 0 : index
    %129 = vector.load %arg8[%c1_67, %c0_68] : memref<10x512xf32, #tpu.memory_space<vmem>>, vector<1x256xf32>
    %130 = vector.broadcast %129 : vector<1x256xf32> to vector<8x256xf32>
    %131 = arith.mulf %128, %130 : vector<8x256xf32>
    %c15_i32_69 = arith.constant 15 : i32
    %132 = tpu.dynamic_rotate %123 by %c15_i32_69 dim 1 : vector<8x256xf32>, i32 -> vector<8x256xf32>
    %c2_70 = arith.constant 2 : index
    %c0_71 = arith.constant 0 : index
    %133 = vector.load %arg8[%c2_70, %c0_71] : memref<10x512xf32, #tpu.memory_space<vmem>>, vector<1x256xf32>
    %134 = vector.broadcast %133 : vector<1x256xf32> to vector<8x256xf32>
    %135 = arith.mulf %132, %134 : vector<8x256xf32>
    %c1_i32_72 = arith.constant 1 : i32
    %136 = tpu.dynamic_rotate %123 by %c1_i32_72 dim 1 : vector<8x256xf32>, i32 -> vector<8x256xf32>
    %c3_73 = arith.constant 3 : index
    %c0_74 = arith.constant 0 : index
    %137 = vector.load %arg8[%c3_73, %c0_74] : memref<10x512xf32, #tpu.memory_space<vmem>>, vector<1x256xf32>
    %138 = vector.broadcast %137 : vector<1x256xf32> to vector<8x256xf32>
    %139 = arith.mulf %136, %138 : vector<8x256xf32>
    %c255_i32 = arith.constant 255 : i32
    %140 = tpu.dynamic_rotate %123 by %c255_i32 dim 1 : vector<8x256xf32>, i32 -> vector<8x256xf32>
    %c5_75 = arith.constant 5 : index
    %c0_76 = arith.constant 0 : index
    %141 = vector.load %arg8[%c5_75, %c0_76] : memref<10x512xf32, #tpu.memory_space<vmem>>, vector<1x256xf32>
    %142 = vector.broadcast %141 : vector<1x256xf32> to vector<8x256xf32>
    %143 = arith.mulf %140, %142 : vector<8x256xf32>
    %c241_i32 = arith.constant 241 : i32
    %144 = tpu.dynamic_rotate %123 by %c241_i32 dim 1 : vector<8x256xf32>, i32 -> vector<8x256xf32>
    %c6_77 = arith.constant 6 : index
    %c0_78 = arith.constant 0 : index
    %145 = vector.load %arg8[%c6_77, %c0_78] : memref<10x512xf32, #tpu.memory_space<vmem>>, vector<1x256xf32>
    %146 = vector.broadcast %145 : vector<1x256xf32> to vector<8x256xf32>
    %147 = arith.mulf %144, %146 : vector<8x256xf32>
    %c240_i32 = arith.constant 240 : i32
    %148 = tpu.dynamic_rotate %123 by %c240_i32 dim 1 : vector<8x256xf32>, i32 -> vector<8x256xf32>
    %c7_79 = arith.constant 7 : index
    %c0_80 = arith.constant 0 : index
    %149 = vector.load %arg8[%c7_79, %c0_80] : memref<10x512xf32, #tpu.memory_space<vmem>>, vector<1x256xf32>
    %150 = vector.broadcast %149 : vector<1x256xf32> to vector<8x256xf32>
    %151 = arith.mulf %148, %150 : vector<8x256xf32>
    %c239_i32 = arith.constant 239 : i32
    %152 = tpu.dynamic_rotate %123 by %c239_i32 dim 1 : vector<8x256xf32>, i32 -> vector<8x256xf32>
    %c8_81 = arith.constant 8 : index
    %c0_82 = arith.constant 0 : index
    %153 = vector.load %arg8[%c8_81, %c0_82] : memref<10x512xf32, #tpu.memory_space<vmem>>, vector<1x256xf32>
    %154 = vector.broadcast %153 : vector<1x256xf32> to vector<8x256xf32>
    %155 = arith.mulf %152, %154 : vector<8x256xf32>
    %c9_83 = arith.constant 9 : index
    %c0_84 = arith.constant 0 : index
    %156 = vector.load %arg8[%c9_83, %c0_84] : memref<10x512xf32, #tpu.memory_space<vmem>>, vector<1x256xf32>
    %157 = tpu.concatenate %127, %131, %135, %139, %123, %143, %147, %151, %155, %156 in 0 : vector<8x256xf32>, vector<8x256xf32>, vector<8x256xf32>, vector<8x256xf32>, vector<8x256xf32>, vector<8x256xf32>, vector<8x256xf32>, vector<8x256xf32>, vector<8x256xf32>, vector<1x256xf32> -> vector<73x256xf32>
    %158 = arith.truncf %157 : vector<73x256xf32> to vector<73x256xbf16>
    %c0_85 = arith.constant 0 : index
    %c0_86 = arith.constant 0 : index
    %159 = vector.load %arg6[%c0_85, %c0_86] : memref<4x73xbf16, #tpu.memory_space<vmem>>, vector<4x73xbf16>
    %cst_87 = arith.constant dense<0.000000e+00> : vector<4x256xf32>
    %160 = tpu.matmul %159, %158, %cst_87 {dimension_numbers = #tpu.dot_dimension_numbers<[1], [0], [0], [1], [0, 0, 1, 1], [], []>} : vector<4x73xbf16>, vector<73x256xbf16>, vector<4x256xf32> -> vector<4x256xf32>
    %cst_88 = arith.constant 0.000000e+00 : f32
    %161 = vector.broadcast %cst_88 : f32 to vector<4x256xf32>
    %162 = arith.cmpf ogt, %160, %161 : vector<4x256xf32>
    %cst_89 = arith.constant 1.000000e-01 : f32
    %163 = vector.broadcast %cst_89 : f32 to vector<4x256xf32>
    %164 = arith.mulf %163, %160 : vector<4x256xf32>
    %165 = arith.select %162, %160, %164 : vector<4x256xi1>, vector<4x256xf32>
    %c17_i32_90 = arith.constant 17 : i32
    %166 = tpu.dynamic_rotate %165 by %c17_i32_90 dim 1 : vector<4x256xf32>, i32 -> vector<4x256xf32>
    %c0_91 = arith.constant 0 : index
    %c0_92 = arith.constant 0 : index
    %167 = vector.load %arg8[%c0_91, %c0_92] : memref<10x512xf32, #tpu.memory_space<vmem>>, vector<1x256xf32>
    %168 = vector.broadcast %167 : vector<1x256xf32> to vector<4x256xf32>
    %169 = arith.mulf %166, %168 : vector<4x256xf32>
    %c16_i32_93 = arith.constant 16 : i32
    %170 = tpu.dynamic_rotate %165 by %c16_i32_93 dim 1 : vector<4x256xf32>, i32 -> vector<4x256xf32>
    %c1_94 = arith.constant 1 : index
    %c0_95 = arith.constant 0 : index
    %171 = vector.load %arg8[%c1_94, %c0_95] : memref<10x512xf32, #tpu.memory_space<vmem>>, vector<1x256xf32>
    %172 = vector.broadcast %171 : vector<1x256xf32> to vector<4x256xf32>
    %173 = arith.mulf %170, %172 : vector<4x256xf32>
    %c15_i32_96 = arith.constant 15 : i32
    %174 = tpu.dynamic_rotate %165 by %c15_i32_96 dim 1 : vector<4x256xf32>, i32 -> vector<4x256xf32>
    %c2_97 = arith.constant 2 : index
    %c0_98 = arith.constant 0 : index
    %175 = vector.load %arg8[%c2_97, %c0_98] : memref<10x512xf32, #tpu.memory_space<vmem>>, vector<1x256xf32>
    %176 = vector.broadcast %175 : vector<1x256xf32> to vector<4x256xf32>
    %177 = arith.mulf %174, %176 : vector<4x256xf32>
    %c1_i32_99 = arith.constant 1 : i32
    %178 = tpu.dynamic_rotate %165 by %c1_i32_99 dim 1 : vector<4x256xf32>, i32 -> vector<4x256xf32>
    %c3_100 = arith.constant 3 : index
    %c0_101 = arith.constant 0 : index
    %179 = vector.load %arg8[%c3_100, %c0_101] : memref<10x512xf32, #tpu.memory_space<vmem>>, vector<1x256xf32>
    %180 = vector.broadcast %179 : vector<1x256xf32> to vector<4x256xf32>
    %181 = arith.mulf %178, %180 : vector<4x256xf32>
    %c255_i32_102 = arith.constant 255 : i32
    %182 = tpu.dynamic_rotate %165 by %c255_i32_102 dim 1 : vector<4x256xf32>, i32 -> vector<4x256xf32>
    %c5_103 = arith.constant 5 : index
    %c0_104 = arith.constant 0 : index
    %183 = vector.load %arg8[%c5_103, %c0_104] : memref<10x512xf32, #tpu.memory_space<vmem>>, vector<1x256xf32>
    %184 = vector.broadcast %183 : vector<1x256xf32> to vector<4x256xf32>
    %185 = arith.mulf %182, %184 : vector<4x256xf32>
    %c241_i32_105 = arith.constant 241 : i32
    %186 = tpu.dynamic_rotate %165 by %c241_i32_105 dim 1 : vector<4x256xf32>, i32 -> vector<4x256xf32>
    %c6_106 = arith.constant 6 : index
    %c0_107 = arith.constant 0 : index
    %187 = vector.load %arg8[%c6_106, %c0_107] : memref<10x512xf32, #tpu.memory_space<vmem>>, vector<1x256xf32>
    %188 = vector.broadcast %187 : vector<1x256xf32> to vector<4x256xf32>
    %189 = arith.mulf %186, %188 : vector<4x256xf32>
    %c240_i32_108 = arith.constant 240 : i32
    %190 = tpu.dynamic_rotate %165 by %c240_i32_108 dim 1 : vector<4x256xf32>, i32 -> vector<4x256xf32>
    %c7_109 = arith.constant 7 : index
    %c0_110 = arith.constant 0 : index
    %191 = vector.load %arg8[%c7_109, %c0_110] : memref<10x512xf32, #tpu.memory_space<vmem>>, vector<1x256xf32>
    %192 = vector.broadcast %191 : vector<1x256xf32> to vector<4x256xf32>
    %193 = arith.mulf %190, %192 : vector<4x256xf32>
    %c239_i32_111 = arith.constant 239 : i32
    %194 = tpu.dynamic_rotate %165 by %c239_i32_111 dim 1 : vector<4x256xf32>, i32 -> vector<4x256xf32>
    %c8_112 = arith.constant 8 : index
    %c0_113 = arith.constant 0 : index
    %195 = vector.load %arg8[%c8_112, %c0_113] : memref<10x512xf32, #tpu.memory_space<vmem>>, vector<1x256xf32>
    %196 = vector.broadcast %195 : vector<1x256xf32> to vector<4x256xf32>
    %197 = arith.mulf %194, %196 : vector<4x256xf32>
    %c9_114 = arith.constant 9 : index
    %c0_115 = arith.constant 0 : index
    %198 = vector.load %arg8[%c9_114, %c0_115] : memref<10x512xf32, #tpu.memory_space<vmem>>, vector<1x256xf32>
    %199 = tpu.concatenate %169, %173, %177, %181, %165, %185, %189, %193, %197, %198 in 0 : vector<4x256xf32>, vector<4x256xf32>, vector<4x256xf32>, vector<4x256xf32>, vector<4x256xf32>, vector<4x256xf32>, vector<4x256xf32>, vector<4x256xf32>, vector<4x256xf32>, vector<1x256xf32> -> vector<37x256xf32>
    %200 = arith.truncf %199 : vector<37x256xf32> to vector<37x256xbf16>
    %c0_116 = arith.constant 0 : index
    %c0_117 = arith.constant 0 : index
    %201 = vector.load %arg7[%c0_116, %c0_117] : memref<4x37xbf16, #tpu.memory_space<vmem>>, vector<4x37xbf16>
    %cst_118 = arith.constant dense<0.000000e+00> : vector<4x256xf32>
    %202 = tpu.matmul %201, %200, %cst_118 {dimension_numbers = #tpu.dot_dimension_numbers<[1], [0], [0], [1], [0, 0, 1, 1], [], []>} : vector<4x37xbf16>, vector<37x256xbf16>, vector<4x256xf32> -> vector<4x256xf32>
    %cst_119 = arith.constant 0.000000e+00 : f32
    %203 = vector.broadcast %cst_119 : f32 to vector<4x256xf32>
    %204 = arith.cmpf ogt, %202, %203 : vector<4x256xf32>
    %cst_120 = arith.constant 1.000000e-01 : f32
    %205 = vector.broadcast %cst_120 : f32 to vector<4x256xf32>
    %206 = arith.mulf %205, %202 : vector<4x256xf32>
    %207 = arith.select %204, %202, %206 : vector<4x256xi1>, vector<4x256xf32>
    %208 = arith.addf %207, %1 : vector<4x256xf32>
    %c0_121 = arith.constant 0 : index
    %c0_122 = arith.constant 0 : index
    %c0_123 = arith.constant 0 : index
    %209 = vector.load %arg9[%c0_121, %c0_122, %c0_123] : memref<1x4x256xf32, #tpu.memory_space<vmem>>, vector<1x4x256xf32>
    %210 = vector.shape_cast %209 : vector<1x4x256xf32> to vector<4x256xf32>
    %211 = vector.shape_cast %208 : vector<4x256xf32> to vector<1x4x256xf32>
    tpu.vector_store %arg9[%c0_121, %c0_122, %c0_123], %211 {strides = array<i32>} : memref<1x4x256xf32, #tpu.memory_space<vmem>>, vector<1x4x256xf32>,
    return
  }
  func.func @transform_0(%arg0: i32) -> (i32, i32, i32) {
    %c0_i32 = arith.constant 0 : i32
    %c0_i32_0 = arith.constant 0 : i32
    %c0_i32_1 = arith.constant 0 : i32
    return %arg0, %c0_i32, %c0_i32_0 : i32, i32, i32
  }
  func.func @transform_1(%arg0: i32) -> (i32, i32) {
    %c0_i32 = arith.constant 0 : i32
    %c0_i32_0 = arith.constant 0 : i32
    %c0_i32_1 = arith.constant 0 : i32
    return %c0_i32, %c0_i32_0 : i32, i32
  }
  func.func @transform_2(%arg0: i32) -> (i32, i32) {
    %c0_i32 = arith.constant 0 : i32
    %c0_i32_0 = arith.constant 0 : i32
    %c0_i32_1 = arith.constant 0 : i32
    return %c0_i32, %c0_i32_0 : i32, i32
  }
  func.func @transform_3(%arg0: i32) -> (i32, i32) {
    %c0_i32 = arith.constant 0 : i32
    %c0_i32_0 = arith.constant 0 : i32
    %c0_i32_1 = arith.constant 0 : i32
    return %c0_i32, %c0_i32_0 : i32, i32
  }
  func.func @transform_4(%arg0: i32) -> (i32, i32) {
    %c0_i32 = arith.constant 0 : i32
    %c0_i32_0 = arith.constant 0 : i32
    %c0_i32_1 = arith.constant 0 : i32
    return %c0_i32, %c0_i32_0 : i32, i32
  }
  func.func @transform_5(%arg0: i32) -> (i32, i32) {
    %c0_i32 = arith.constant 0 : i32
    %c0_i32_0 = arith.constant 0 : i32
    %c0_i32_1 = arith.constant 0 : i32
    return %c0_i32, %c0_i32_0 : i32, i32
  }
  func.func @transform_6(%arg0: i32) -> (i32, i32) {
    %c0_i32 = arith.constant 0 : i32
    %c0_i32_0 = arith.constant 0 : i32
    %c0_i32_1 = arith.constant 0 : i32
    return %c0_i32, %c0_i32_0 : i32, i32
  }
  func.func @transform_7(%arg0: i32) -> (i32, i32) {
    %c0_i32 = arith.constant 0 : i32
    %c0_i32_0 = arith.constant 0 : i32
    %c0_i32_1 = arith.constant 0 : i32
    return %c0_i32, %c0_i32_0 : i32, i32
  }
  func.func @transform_8(%arg0: i32) -> (i32, i32, i32) {
    %c0_i32 = arith.constant 0 : i32
    %c0_i32_0 = arith.constant 0 : i32
    %c0_i32_1 = arith.constant 0 : i32
    return %arg0, %c0_i32, %c0_i32_0 : i32, i32, i32
  }
}

</mosaic_0001>

<bundles_post_ra>
// kernel: tpu_custom_call.1
= control target key start
LH: loop header
LB: loop body
LE: loop exit
PB: predicated region body
PF: predicated region fallthrough
CT: control target
= control target key end

     0   :  { %s3442_s0 = inlined_call_operand.hbm [shape: f32[2,4,256], index: 0, kind: input, shape index: {}]   ;;  %s3443_s1 = inlined_call_operand.hbm [shape: bf16[8,37], index: 1, kind: input, shape index: {}]   ;;  %s3444_s2 = inlined_call_operand.vmem [shape: bf16[4,37], index: 2, kind: input, shape index: {}]   ;;  %s3445_s3 = inlined_call_operand.hbm [shape: bf16[4,4], index: 3, kind: input, shape index: {}]   ;;  %s3446_s4 = inlined_call_operand.vmem [shape: bf16[8,13], index: 4, kind: input, shape index: {}]   ;;  %s3447_s5 = inlined_call_operand.vmem [shape: bf16[4,73], index: 5, kind: input, shape index: {}]   ;;  %s3448_s6 = inlined_call_operand.vmem [shape: bf16[4,37], index: 6, kind: input, shape index: {}]   ;;  %s3449_s7 = inlined_call_operand.hbm [shape: f32[10,512], index: 7, kind: input, shape index: {}]   ;;  %s3450_s8 = inlined_call_operand.hbm [shape: f32[2,4,256], index: 8, kind: output, shape index: {}]  }
   0x1   :  { %3471 = sst [smem:[#allocation25_spill]] %s3443_s1 }
   0x2   :  { %3472 = sst [smem:[#allocation26_spill]] %s3445_s3 }
   0x3   :  { %3473 = sst [smem:[#allocation27_spill]] %s3449_s7 }
   0x4   :  { %13 = vsyncpa [#allocation3], 0 }
   0x5   :  { %15 = vsyncpa [#allocation3 + $0x1], 0 }
   0x6   :  { %16 = vsyncpa [#allocation6], 0 }
   0x7   :  { %17 = vsyncpa [#allocation9], 0 }
   0x8   :  { %18 = vsyncpa [#allocation4], 0 }
   0x9   :  { %20 = vsyncpa [#allocation4 + $0x1], 0  ;;  %s2354_s27 = smov 0   ;;  %s2356_s28 = smov 0  }
   0xa   :  { %s2358_s29 = smov 0   ;;  %s2360_s30 = smov 0  }
   0xb LB: > { %s2375_s9 = sadd.s32 4294967295, %s2289_s30   ;;  %s1984_s10 = sadd.s32 4294967294, %s2289_s30   ;;  %s2289_s30 = sphi %s2360_s30, %s3518_s30   ;;  %s2285_s29 = sphi %s2358_s29, %s3517_s29   ;;  %s2281_s28 = sphi %s2356_s28, %s3516_s28   ;;  %s2277_s27 = sphi %s2354_s27, %s3515_s27  }
   0xc   : > { %p46_p0 = scmp.ne.s32.totalorder %s2281_s28, %s2277_s27  ;;  %p3451_p1 = scmp.eq.s32.totalorder %s2375_s9, 0 }
   0xd   : > { %p223_p3 = scmp.eq.s32.totalorder %s1984_s10, 1  ;;  %p1985_p5 = scmp.ge.s32.totalorder %s2289_s30, 1 }
   0xe   : > { %p2384_p4 = por %p3451_p1, %p46_p0  ;;  %p230_p7 = scmp.lt.s32.totalorder %s2289_s30, 3 }
   0xf   : > { %p2389_p6 = por %p223_p3, %p46_p0  ;;  %s2291_s14 = smov [#allocation5]  }
  0x10   : > { %s3474_s11 = scalar_select %p2384_p4, 1, 0 }
  0x11   : > { %s3475_s12 = scalar_select %p2389_p6, 1, 0 }
  0x12   : > { %p2394_p8 = pnand %p1985_p5, %p230_p7  ;;  %s243_s15 = sshll.u32 %s2291_s14, 4  ;;  %s244_s15 = int_to_ptr.vmem [resolvable:$true] %s243_s15 }
  0x13   : > { %s2292_s16 = smov [#allocation7]   ;;  %s2293_s19 = smov [#allocation8]  }
  0x14   : > { %s3476_s13 = scalar_select %p2394_p8, 1, 0 }
  0x15   : > { %p2033_p10 = pneg %p2394_p8  ;;  %s257_s17 = sshll.u32 %s2292_s16, 4  ;;  %s258_s17 = int_to_ptr.vmem [resolvable:$true] %s257_s17 }
  0x16   : > { %s276_s20 = sshll.u32 %s2293_s19, 4  ;;  %s2122_s21 = scalar_lea.vmem %s244_s15, 64  ;;  %s2407_s20 = int_to_ptr.vmem [resolvable:$true] %s276_s20 }
  0x17   : > { %p2403_p11 = pnand %p2033_p10, %p3451_p1  ;;  %p2123_p13 = scmp.ne.s32.totalorder %s244_s15, %s2122_s21 }
  0x18   : > { %p2130_p5 = scmp.lt.s32.totalorder %s244_s15, %s244_s15  ;;  %p2131_p7 = scmp.lt.s32.totalorder %s2122_s21, %s2122_s21 }
  0x19   : > { %p2113_p12 = pneg %p2403_p11 }
  0x1a   : > { %p2132_p10 = por %p2131_p7, %p2130_p5 }
  0x1b   : > { %p2125_p0 = pnand %p2123_p13, %p2113_p12 }
  0x1d   : > { %p2126_p3 = pneg %p2125_p0 }
  0x1f   : > { %p2133_p9 = pnand %p2132_p10, %p2126_p3 }
  0x21   : > { %2136 = shalt.err (!%p2133_p9)
}
  0x22   : > { %s3478_s1 = sld [smem:[#allocation25_spill]]  ;;  %s2148_s24 = scalar_lea.vmem %s258_s17, 32 }
  0x23   : > { %p2149_p1 = scmp.ne.s32.totalorder %s258_s17, %s2148_s24  ;;  %p2156_p13 = scmp.lt.s32.totalorder %s258_s17, %s258_s17 }
  0x24   : > { %p2157_p0 = scmp.lt.s32.totalorder %s2148_s24, %s2148_s24 }
  0x25   : > { %p2151_p2 = pnand %p2149_p1, %p2113_p12 }
  0x26   : > { %p2158_p4 = por %p2157_p0, %p2156_p13 }
  0x27   : > { %p2152_p6 = pneg %p2151_p2 }
  0x28   : > { %2036 = dma.hbm_to_vmem [thread:$0]  (!%p2403_p11), %s3478_s1, 64, %s244_s15, [#allocation6]  }
  0x29   : > { %p2159_p8 = pnand %p2158_p4, %p2152_p6 }
  0x2b   : > { %2162 = shalt.err (!%p2159_p8)
}
  0x2c   : > { %s3479_s3 = sld [smem:[#allocation26_spill]]  ;;  %s2174_s10 = scalar_lea.vmem %s2407_s20, 1024 }
  0x2d   : > { %p2175_p9 = scmp.ne.s32.totalorder %s2407_s20, %s2174_s10  ;;  %p2182_p3 = scmp.lt.s32.totalorder %s2407_s20, %s2407_s20 }
  0x2e   : > { %p2183_p4 = scmp.lt.s32.totalorder %s2174_s10, %s2174_s10 }
  0x2f   : > { %p2177_p1 = pnand %p2175_p9, %p2113_p12 }
  0x30   : > { %p2184_p6 = por %p2183_p4, %p2182_p3 }
  0x31   : > { %p2178_p2 = pneg %p2177_p1 }
  0x32   : > { %2039 = dma.hbm_to_vmem [thread:$0]  (!%p2403_p11), %s3479_s3, 32, %s258_s17, [#allocation6]  }
  0x33   : > { %p2185_p8 = pnand %p2184_p6, %p2178_p2 }
  0x35   : > { %2188 = shalt.err (!%p2185_p8)
}
  0x36   : > { %s2294_s14 = smov 512   ;;  %s2295_s15 = smov 32  }
  0x37   : > { %s3480_s7 = sld [smem:[#allocation27_spill]]  ;;  %s2441_s19 = sadd.s32 1, %s2289_s30  }
  0x38   : > { %s30_s21 = ssub.s32 %s2289_s30, %s2441_s19  ;;  %s33_s22 = sadd.s32 1, %s2285_s29 }
  0x39   : > { %p31_p12 = scmp.eq.s32.totalorder %s30_s21, 0  ;;  %p40_p5 = scmp.ne.s32.totalorder %s2285_s29, %s2281_s28 }
  0x3a   : > { %p41_p7 = scmp.eq.s32.totalorder %s2289_s30, 0  ;;  %p2054_p10 = scmp.lt.s32.totalorder %s2289_s30, 2 }
  0x3b   : > { %s2451_s23 = scalar_select %p31_p12, %s2285_s29, %s33_s22  }
  0x3c   : > { %p42_p13 = por %p41_p7, %p40_p5  ;;  %p3481_p0 = scmp.eq.s32.totalorder %s2375_s9, 1 }
  0x3d   : > { %2042 = dma.hbm_to_vmem [thread:$0]  (!%p2403_p11), %s3480_s7, 1024, %s2407_s20, [#allocation9], %s2294_s14, %s2294_s14, %s2295_s15  }
  0x3e   : > { %p2455_p9 = por %p3481_p0, %p40_p5  ;;  %s290_s18 = sand.u32 1, %s2285_s29  }
  0x3f   : > { %s2015_s25 = sshll.u32 %s2289_s30, 7  ;;  %s1990_s20 = sshll.u32 %s290_s18, 3 }
  0x40   : > { %s3482_s24 = scalar_select %p2455_p9, 1, 0 }
  0x41   : > { %s2464_s14 = scalar_lea.hbm %s3442_s0, %s2015_s25  ;;  %s294_s15 = scalar_lea.vmem [#allocation2], %s1990_s20 }
  0x42   : > { %s302_s16 = sshll.u32 %s294_s15, 4  ;;  %p2466_p11 = pnand %p2054_p10, %p42_p13  ;;  %s303_s16 = int_to_ptr.vmem [resolvable:$true] %s302_s16 }
  0x43   : > { %s291_s21 = scalar_lea.sflag [#allocation3], %s290_s18  ;;  %s2189_s22 = scalar_lea.hbm %s2464_s14, 128 }
  0x44   : > { %p2190_p1 = scmp.ne.s32.totalorder %s2464_s14, %s2189_s22  ;;  %p2191_p2 = pneg %p2466_p11 }
  0x45   : > { %s2194_s10 = scalar_lea.hbm %s3442_s0, 256  ;;  %p2195_p6 = scmp.lt.s32.totalorder %s2464_s14, %s3442_s0 }
  0x46   : > { %p2192_p3 = pnand %p2191_p2, %p2190_p1  ;;  %p2196_p8 = scmp.lt.s32.totalorder %s2194_s10, %s2189_s22 }
  0x48   : > { %p2193_p4 = pneg %p2192_p3  ;;  %p2197_p12 = por %p2196_p8, %p2195_p6 }
  0x4a   : > { %p2198_p5 = pnand %p2197_p12, %p2193_p4 }
  0x4c   : > { %2201 = shalt.err (!%p2198_p5)
}
  0x4d   : > { %s2202_s15 = scalar_lea.vmem %s303_s16, 128  ;;  %s2296_s18 = smov [#allocation2]  }
  0x4e   : > { %p2203_p7 = scmp.ne.s32.totalorder %s303_s16, %s2202_s15  ;;  %s2207_s3 = sshll.u32 %s2296_s18, 4  ;;  %s2208_s3 = int_to_ptr.vmem [resolvable:$false] %s2207_s3 }
  0x4f   : > { %s2209_s7 = scalar_lea.vmem %s2208_s3, 256  ;;  %p2210_p0 = scmp.lt.s32.totalorder %s303_s16, %s2208_s3 }
  0x50   : > { %p2205_p10 = pnand %p2203_p7, %p2191_p2  ;;  %p2211_p1 = scmp.lt.s32.totalorder %s2209_s7, %s2202_s15 }
  0x52   : > { %p2206_p13 = pneg %p2205_p10  ;;  %p2212_p3 = por %p2211_p1, %p2210_p0 }
  0x54   : > { %p2213_p9 = pnand %p2212_p3, %p2206_p13 }
  0x56   : > { %2216 = shalt.err (!%p2213_p9)
}
  0x57   : > { %2046 = dma.hbm_to_vmem [thread:$0]  (!%p2466_p11), %s2464_s14, 128, %s303_s16, %s291_s21  }
  0x58   : > { %p3484_p4 = scmp.ne.s32.totalorder %s3476_s13, 0 }
  0x5a   : > { %311 = sbr.rel (%p3484_p4) target bundleno = 1995 (0x7cb), region = 52 }
  0x5f   : > { %s2487_s1 = sand.u32 1, %s2281_s28   ;;  %p3485_p9 = scmp.ne.s32.totalorder %s3474_s11, 0 }
  0x60   : > { %s1994_s22 = sshll.u32 %s2487_s1, 3  ;;  %s314_s3 = scalar_lea.sflag [#allocation3], %s2487_s1 }
  0x61   : > { %s2493_s7 = scalar_lea.vmem [#allocation2], %s1994_s22 }
  0x62   : > { %2260 = dma.done.wait (%p3485_p9), %s314_s3, 128  }
  0x63   : > { %2262 = vsyncadd (%p3485_p9), %s314_s3, 4294967168  ;;  %p3486_p11 = scmp.eq.s32.totalorder %s2375_s9, 0 }
  0x65   : > { %2264 = dma.done.wait (%p3486_p11), [#allocation6], 96   ;;  %p3487_p2 = pmov %p3486_p11 }
  0x67   : > { %2266 = vsyncadd (%p3487_p2), [#allocation6], 4294967200  ;;  %p3488_p6 = pmov %p3487_p2 }
  0x68   : > { %p3489_p8 = pmov %p3487_p2 }
  0x69   : > { %2268 = dma.done.wait (%p3488_p6), [#allocation9], 1024  }
  0x6a   : > { %2270 = vsyncadd (%p3489_p8), [#allocation9], 4294966272  ;;  %v2508_v0 = vld [vmem:[%s2493_s7] sm:$0xff]  ;;  %s2297_s11 = smov 111   ;;  %s2298_s13 = smov 127   ;;  %v3457_v6 = vmov 0   ;;  %v379_v7 = vlaneseq }
  0x6b   : > { %v2511_v1 = vmax.f32 %v2508_v0, 0.0  ;;  %v408_v2 = vsub.f32 0.0, %v2508_v0  ;;  %s2299_s14 = smov 112   ;;  %s2300_s16 = smov 113   ;;  %893 = vmatprep.mubr.bf16.mxu0 %v3457_v6  ;;  %934 = vmatprep.mubr.bf16.mxu1 %v3457_v6  ;;  %vm367_vm1 = vcmask 1043456   ;;  %vm845_vm2 = vcmask 1041408  }
  0x6c   : > { %s2301_s17 = smov 16   ;;  %s2302_s21 = smov 1   ;;  %v2590_v8 = vshrl.u32 %v379_v7, 7  ;;  %v2592_v9 = vand.u32 127, %v379_v7  ;;  %vm846_vm3 = vcmask 1042432   ;;  %v3455_v30 = vmov 65535  }
  0x6d   : > { %697 = vrot.lane.b32.xlu1 %v2511_v1, %s2297_s11  ;;  %v2518_v3 = vcombine.high %v2511_v1, %v2511_v1  ;;  %v2520_v4 = vmax.f32 %v408_v2, 0.0  ;;  %s2303_s25 = smov 17   ;;  %s2304_s26 = smov 15   ;;  %v711_v11 = vld [vmem:[#allocation8 + $0x20] ss:$8 sm:$0xf] }
  0x6e   : > { %3490 = vst [vmem:[#allocation15_spill] sm:$0xff] %v2590_v8  ;;  %v2595_v10 = vsub.s32 0, %v2590_v8  ;;  %vm705_vm0 = vcmp.lt.s32.totalorder %v2592_v9, 111  ;;  %v2602_v14 = vsub.s32 1, %v2590_v8  ;;  %v2616_v23 = vsub.s32 2, %v2590_v8  ;;  %s1871_s20 = scalar_lea.sflag [#allocation4], %s2487_s1 }
  0x6f   : > { %699 = vrot.lane.b32.xlu0 %v2518_v3, %s2297_s11  ;;  %v2532_v5 = vcombine.high %v2520_v4, %v2520_v4  ;;  %v738_v15 = vld [vmem:[#allocation8 + $0x21] ss:$8 sm:$0xf]  ;;  %v2619_v24 = vsub.s32 3, %v2590_v8  ;;  %v847_v31 = vsel %vm845_vm2, 4294967295, %v3455_v30  ;;  %vm585_vm4 = vcmp.lt.s32.totalorder %v2592_v9, 127 }
  0x70   : > { %3491 = vst [vmem:[#allocation16_spill] sm:$0xff] %v2595_v10  ;;  %v2599_v13 = vrot.slane %v711_v11, %v2595_v10  ;;  %3492 = vst [vmem:[#allocation17_spill] sm:$0xff] %v2602_v14  ;;  %v2607_v18 = vrot.slane %v738_v15, %v2595_v10  ;;  %v2613_v21 = vrot.slane %v711_v11, %v2602_v14  ;;  %v2641_v38 = vsel %vm846_vm3, %v847_v31, 0  ;;  %v591_v49 = vld [vmem:[#allocation8 + $0x5] ss:$8 sm:$0xf] }
  0x71   : > { %581 = vrot.lane.b32.xlu1 %v2520_v4, %s2298_s13  ;;  %v2622_v25 = vrot.slane %v738_v15, %v2602_v14  ;;  %v2634_v33 = vrot.slane %v711_v11, %v2616_v23  ;;  %v2637_v34 = vrot.slane %v711_v11, %v2619_v24  ;;  %v2644_v40 = vrot.slane %v738_v15, %v2619_v24  ;;  %v671_v53 = vld [vmem:[#allocation8 + $0x7] ss:$8 sm:$0xf]  ;;  %v631_v2 = vld [vmem:[#allocation8 + $0x6] ss:$8 sm:$0xf] }
  0x72   : > { %v2647_v41 = vrot.slane %v738_v15, %v2616_v23  ;;  %v2663_v56 = vrot.slane %v591_v49, %v2602_v14  ;;  %vm665_vm5 = vcmp.lt.s32.totalorder %v2592_v9, 112  ;;  %v2672_v61 = vrot.slane %v671_v53, %v2602_v14  ;;  %p3512_p5 = scmp.ne.s32.totalorder %s3482_s24, 0 }
  0x73   : > { %701 = vrot.lane.b32.xlu0 %v2520_v4, %s2297_s11  ;;  %v2679_v11 = vrot.slane %v591_v49, %v2595_v10  ;;  %vm625_vm6 = vcmp.lt.s32.totalorder %v2592_v9, 113  ;;  %vm465_vm7 = vcmp.lt.s32.totalorder %v2592_v9, 16  ;;  %vm545_vm8 = vcmp.lt.s32.totalorder %v2592_v9, 1 }
  0x74   : > { %vm426_vm9 = vcmp.lt.s32.totalorder %v2592_v9, 17  ;;  %vm505_vm10 = vcmp.lt.s32.totalorder %v2592_v9, 15  ;;  %vm841_vm11 = vcmask 302080   ;;  %v1806_v9 = vld [vmem:[%s3448_s6] sm:$0x3] }
  0x75   : > { %661 = vrot.lane.b32.xlu1 %v2520_v4, %s2299_s14 }
  0x77   : > { %579 = vrot.lane.b32.xlu0 %v2518_v3, %s2298_s13 }
  0x79   : > { %703 = vrot.lane.b32.xlu1 %v2532_v5, %s2297_s11 }
  0x7b   : > { %659 = vrot.lane.b32.xlu0 %v2518_v3, %s2299_s14 }
  0x7d   : > { %657 = vrot.lane.b32.xlu1 %v2511_v1, %s2299_s14 }
  0x7f   : > { %577 = vrot.lane.b32.xlu0 %v2511_v1, %s2298_s13 }
  0x81   : > { %619 = vrot.lane.b32.xlu1 %v2518_v3, %s2300_s16 }
  0x83   : > { %583 = vrot.lane.b32.xlu0 %v2532_v5, %s2298_s13 }
  0x85   : > { %663 = vrot.lane.b32.xlu1 %v2532_v5, %s2299_s14 }
  0x87   : > { %621 = vrot.lane.b32.xlu0 %v2520_v4, %s2300_s16 }
  0x89   : > { %457 = vrot.lane.b32.xlu1 %v2511_v1, %s2301_s17 }
  0x8b   : > { %617 = vrot.lane.b32.xlu0 %v2511_v1, %s2300_s16 }
  0x8d   : > { %537 = vrot.lane.b32.xlu1 %v2511_v1, %s2302_s21 }
  0x8f   : > { %459 = vrot.lane.b32.xlu0 %v2518_v3, %s2301_s17 }
  0x91   : > { %623 = vrot.lane.b32.xlu1 %v2532_v5, %s2300_s16 }
  0x93   : > { %539 = vrot.lane.b32.xlu0 %v2518_v3, %s2302_s21 }
  0x95   : > { %543 = vrot.lane.b32.xlu1 %v2532_v5, %s2302_s21 }
  0x97   : > { %463 = vrot.lane.b32.xlu0 %v2532_v5, %s2301_s17 }
  0x99   : > { %418 = vrot.lane.b32.xlu1 %v2518_v3, %s2303_s25 }
  0x9b   : > { %416 = vrot.lane.b32.xlu0 %v2511_v1, %s2303_s25 }
  0x9d   : > { %497 = vrot.lane.b32.xlu1 %v2511_v1, %s2304_s26 }
  0x9f   : > { %461 = vrot.lane.b32.xlu0 %v2520_v4, %s2301_s17 }
  0xa1   : > { %541 = vrot.lane.b32.xlu1 %v2520_v4, %s2302_s21 }
  0xa3   : > { %499 = vrot.lane.b32.xlu0 %v2518_v3, %s2304_s26 }
  0xa5   : > { %503 = vrot.lane.b32.xlu1 %v2532_v5, %s2304_s26 }
  0xa7   : > { %422 = vrot.lane.b32.xlu0 %v2532_v5, %s2303_s25 }
  0xa9   : > { %501 = vrot.lane.b32.xlu1 %v2520_v4, %s2304_s26 }
  0xab   : > { %420 = vrot.lane.b32.xlu0 %v2520_v4, %s2303_s25 }
  0xdf   : > { %v698_v12 = vpop.permute.xlu1 %697 }
  0xe1   : > { %v700_v16 = vpop.permute.xlu0 %699 }
  0xe2   : > { %v708_v17 = vsel %vm705_vm0, %v698_v12, %v700_v16 }
  0xe3   : > { %v733_v19 = vmul.f32 %v2599_v13, %v708_v17  ;;  %v2610_v20 = vpop.permute.xlu1 %581  ;;  %v2685_v17 = vrot.slane %v671_v53, %v2595_v10 }
  0xe5   : > { %v702_v22 = vpop.permute.xlu0 %701  ;;  %v824_v27 = vsel %vm367_vm1, %v733_v19, %v2607_v18 }
  0xe6   : > { %v707_v26 = vsel %vm705_vm0, %v700_v16, %v702_v22  ;;  %v836_v36 = vpack.c.bf16 %v824_v27, %v824_v27 }
  0xe7   : > { %v734_v28 = vmul.f32 %v2613_v21, %v707_v26  ;;  %v2629_v29 = vpop.permute.xlu1 %661 }
  0xe8   : > { %v850_v48 = vand.u32 %v2641_v38, %v836_v36 }
  0xe9   : > { %v580_v32 = vpop.permute.xlu0 %579  ;;  %v825_v35 = vsel %vm367_vm1, %v734_v28, %v2622_v25 }
  0xea   : > { %v837_v37 = vpack.c.bf16 %v825_v35, %v825_v35  ;;  %v587_v58 = vsel %vm585_vm4, %v580_v32, %v2610_v20  ;;  %v2698_v35 = vrot.slane %v591_v49, %v2619_v24 }
  0xeb   : > { %v704_v39 = vpop.permute.xlu1 %703  ;;  %v614_v7 = vmul.f32 %v2663_v56, %v587_v58 }
  0xec   : > { %v706_v42 = vsel %vm705_vm0, %v702_v22, %v704_v39  ;;  %v709_v43 = vsel %vm705_vm0, %v704_v39, %v698_v12  ;;  %v853_v44 = vand.u32 %v2641_v38, %v837_v37  ;;  %v2689_v22 = vrot.slane %v631_v2, %v2602_v14 }
  0xed   : > { %v735_v45 = vmul.f32 %v2634_v33, %v706_v42  ;;  %v736_v46 = vmul.f32 %v2637_v34, %v709_v43  ;;  %v660_v47 = vpop.permute.xlu0 %659  ;;  %v768_v27 = vrot.slane %v614_v7, 4  ;;  %v2734_v7 = vrot.slane %v631_v2, %v2616_v23 }
  0xee   : > { %871 = vmatprep.subr.bf16.mxu0 %v853_v44  ;;  %v667_v63 = vsel %vm665_vm5, %v660_v47, %v2629_v29  ;;  %v2707_v44 = vrot.slane %v631_v2, %v2595_v10 }
  0xef   : > { %v658_v50 = vpop.permute.xlu1 %657  ;;  %872 = vmatpush1.bf16.msra.mxu0 %v850_v48  ;;  %v827_v51 = vsel %vm367_vm1, %v736_v46, %v2644_v40  ;;  %v826_v52 = vsel %vm367_vm1, %v735_v45, %v2647_v41  ;;  %v694_v16 = vmul.f32 %v2672_v61, %v667_v63 }
  0xf0   : > { %v839_v54 = vpack.c.bf16 %v827_v51, %v827_v51  ;;  %v838_v55 = vpack.c.bf16 %v826_v52, %v826_v52  ;;  %v668_v26 = vsel %vm665_vm5, %v658_v50, %v660_v47  ;;  %v2715_v47 = vrot.slane %v671_v53, %v2616_v23 }
  0xf1   : > { %v578_v57 = vpop.permute.xlu0 %577  ;;  %v780_v37 = vrot.slane %v694_v16, 4  ;;  %v693_v39 = vmul.f32 %v2685_v17, %v668_v26  ;;  %v817_v52 = vsel %vm367_vm1, %v2518_v3, %v768_v27 }
  0xf2   : > { %v859_v59 = vand.u32 %v2641_v38, %v839_v54  ;;  %v856_v60 = vand.u32 %v2641_v38, %v838_v55  ;;  %v588_v15 = vsel %vm585_vm4, %v578_v57, %v580_v32  ;;  %v2695_v32 = vrot.slane %v591_v49, %v2616_v23 }
  0xf3   : > { %v620_v62 = vpop.permute.xlu1 %619  ;;  %v613_v28 = vmul.f32 %v2679_v11, %v588_v15  ;;  %v2718_v49 = vrot.slane %v671_v53, %v2619_v24 }
  0xf4   : > { %912 = vmatprep.subr.bf16.mxu1 %v859_v59  ;;  %v779_v59 = vrot.slane %v693_v39, 4 }
  0xf5   : > { %913 = vmatpush1.bf16.msra.mxu1 %v856_v60  ;;  %v584_v12 = vpop.permute.xlu0 %583  ;;  %v767_v48 = vrot.slane %v613_v28, 4 }
  0xf6   : > { %v586_v45 = vsel %vm585_vm4, %v2610_v20, %v584_v12  ;;  %v589_v46 = vsel %vm585_vm4, %v584_v12, %v578_v57 }
  0xf7   : > { %v664_v19 = vpop.permute.xlu1 %663  ;;  %v615_v53 = vmul.f32 %v2695_v32, %v586_v45  ;;  %v616_v60 = vmul.f32 %v2698_v35, %v589_v46  ;;  %v816_v15 = vsel %vm367_vm1, %v2511_v1, %v767_v48 }
  0xf8   : > { %v666_v20 = vsel %vm665_vm5, %v2629_v29, %v664_v19  ;;  %v669_v55 = vsel %vm665_vm5, %v664_v19, %v658_v50  ;;  %v2737_v29 = vrot.slane %v631_v2, %v2619_v24 }
  0xf9   : > { %v622_v31 = vpop.permute.xlu0 %621  ;;  %v695_v50 = vmul.f32 %v2715_v47, %v666_v20  ;;  %v769_v26 = vrot.slane %v615_v53, 4  ;;  %v770_v27 = vrot.slane %v616_v60, 4 }
  0xfa   : > { %v627_v36 = vsel %vm625_vm6, %v620_v62, %v622_v31  ;;  %3493 = vst [vmem:[#allocation18_spill] sm:$0xff] %v2737_v29 }
  0xfb   : > { %v654_v42 = vmul.f32 %v2689_v22, %v627_v36  ;;  %v2704_v43 = vpop.permute.xlu1 %457  ;;  %v819_v48 = vsel %vm367_vm1, %v2532_v5, %v770_v27 }
  0xfd   : > { %v618_v51 = vpop.permute.xlu0 %617  ;;  %v821_v54 = vsel %vm367_vm1, %v654_v42, %v780_v37  ;;  %v781_v37 = vrot.slane %v695_v50, 4 }
  0xfe   : > { %v628_v57 = vsel %vm625_vm6, %v618_v51, %v620_v62  ;;  %v833_v58 = vpack.c.bf16 %v821_v54, %v817_v52  ;;  %v696_v62 = vmul.f32 %v2718_v49, %v669_v55 }
  0xff   : > { %v653_v3 = vmul.f32 %v2707_v44, %v628_v57  ;;  %v538_v63 = vpop.permute.xlu1 %537  ;;  %v471_v57 = vld [vmem:[#allocation8 + $0x1] ss:$8 sm:$0xf] }
 0x100   : > { %873 = vmatprep.subr.bf16.mxu0 %v833_v58  ;;  %v782_v39 = vrot.slane %v696_v62, 4  ;;  %v2761_v53 = vrot.slane %v471_v57, %v2602_v14  ;;  %v2782_v27 = vrot.slane %v471_v57, %v2616_v23 }
 0x101   : > { %v460_v12 = vpop.permute.xlu0 %459  ;;  %v820_v16 = vsel %vm367_vm1, %v653_v3, %v779_v59  ;;  %v551_v59 = vld [vmem:[#allocation8 + $0x3] ss:$8 sm:$0xf] }
 0x102   : > { %v832_v19 = vpack.c.bf16 %v820_v16, %v816_v15  ;;  %v468_v60 = vsel %vm465_vm7, %v2704_v43, %v460_v12  ;;  %v2767_v3 = vrot.slane %v551_v59, %v2602_v14  ;;  %v511_v15 = vld [vmem:[#allocation8 + $0x2] ss:$8 sm:$0xf]  ;;  %v2773_v16 = vrot.slane %v551_v59, %v2595_v10 }
 0x103   : > { %v624_v28 = vpop.permute.xlu1 %623 }
 0x104   : > { %v626_v36 = vsel %vm625_vm6, %v622_v31, %v624_v28  ;;  %v629_v2 = vsel %vm625_vm6, %v624_v28, %v618_v51  ;;  %874 = vmatpush1.bf16.msra.mxu0 %v832_v19  ;;  %v818_v31 = vsel %vm367_vm1, %v2520_v4, %v769_v26  ;;  %v431_v4 = vld [vmem:[#allocation8] ss:$8 sm:$0xf]  ;;  %v2776_v19 = vrot.slane %v471_v57, %v2595_v10 }
 0x105   : > { %v655_v42 = vmul.f32 %v2734_v7, %v626_v36  ;;  %v656_v45 = vmul.f32 %v2737_v29, %v629_v2  ;;  %v540_v1 = vpop.permute.xlu0 %539  ;;  %v2779_v26 = vrot.slane %v431_v4, %v2602_v14  ;;  %v494_v36 = vmul.f32 %v2761_v53, %v468_v60 }
 0x106   : > { %v548_v62 = vsel %vm545_vm8, %v538_v63, %v540_v1  ;;  %3494 = vst [vmem:[#allocation19_spill] sm:$0xff] %v2776_v19 }
 0x107   : > { %v544_v46 = vpop.permute.xlu1 %543  ;;  %v823_v52 = vsel %vm367_vm1, %v656_v45, %v782_v39  ;;  %v822_v54 = vsel %vm367_vm1, %v655_v42, %v781_v37  ;;  %v2789_v37 = vrot.slane %v471_v57, %v2619_v24  ;;  %v2792_v39 = vrot.slane %v551_v59, %v2616_v23 }
 0x108   : > { %v835_v51 = vpack.c.bf16 %v823_v52, %v819_v48  ;;  %v834_v20 = vpack.c.bf16 %v822_v54, %v818_v31  ;;  %v574_v42 = vmul.f32 %v2767_v3, %v548_v62  ;;  %v549_v45 = vsel %vm545_vm8, %v544_v46, %v538_v63 }
 0x109   : > { %v464_v55 = vpop.permute.xlu0 %463  ;;  %v2799_v52 = vrot.slane %v511_v15, %v2602_v14  ;;  %v2805_v54 = vrot.slane %v551_v59, %v2619_v24  ;;  %v2817_v62 = vrot.slane %v511_v15, %v2616_v23  ;;  %v744_v59 = vrot.slane %v494_v36, 4 }
 0x10a   : > { %914 = vmatprep.subr.bf16.mxu1 %v835_v51  ;;  %v469_v31 = vsel %vm465_vm7, %v464_v55, %v2704_v43  ;;  %v2808_v51 = vrot.slane %v511_v15, %v2595_v10  ;;  %v2820_v43 = vrot.slane %v511_v15, %v2619_v24  ;;  %v573_v30 = vmul.f32 %v2773_v16, %v549_v45 }
 0x10b   : > { %v2756_v58 = vpop.permute.xlu1 %418  ;;  %915 = vmatpush1.bf16.msra.mxu1 %v834_v20  ;;  %v2811_v20 = vrot.slane %v431_v4, %v2595_v10  ;;  %v2826_v14 = vrot.slane %v431_v4, %v2616_v23  ;;  %v493_v10 = vmul.f32 %v2776_v19, %v469_v31 }
 0x10c   : > { %3495 = vst [vmem:[#allocation20_spill] sm:$0xff] %v2808_v51 }
 0x10d   : > { %v417_v5 = vpop.permute.xlu0 %416 }
 0x10e   : > { %v429_v2 = vsel %vm426_vm9, %v417_v5, %v2756_v58 }
 0x10f   : > { %v498_v50 = vpop.permute.xlu1 %497  ;;  %v454_v63 = vmul.f32 %v2779_v26, %v429_v2  ;;  %v756_v2 = vrot.slane %v574_v42, 4 }
 0x111   : > { %v462_v28 = vpop.permute.xlu0 %461  ;;  %v809_v19 = vsel %vm367_vm1, %v454_v63, %v744_v59 }
 0x112   : > { %v467_v57 = vsel %vm465_vm7, %v460_v12, %v462_v28  ;;  %v466_v12 = vsel %vm465_vm7, %v462_v28, %v464_v55  ;;  %v755_v28 = vrot.slane %v573_v30, 4 }
 0x113   : > { %v542_v48 = vpop.permute.xlu1 %541  ;;  %v495_v15 = vmul.f32 %v2782_v27, %v467_v57  ;;  %v496_v57 = vmul.f32 %v2789_v37, %v466_v12 }
 0x114   : > { %v546_v36 = vsel %vm545_vm8, %v542_v48, %v544_v46  ;;  %v547_v45 = vsel %vm545_vm8, %v540_v1, %v542_v48  ;;  %v743_v48 = vrot.slane %v493_v10, 4 }
 0x115   : > { %v500_v60 = vpop.permute.xlu0 %499  ;;  %v745_v59 = vrot.slane %v495_v15, 4 }
 0x116   : > { %v508_v6 = vsel %vm505_vm10, %v498_v50, %v500_v60 }
 0x117   : > { %v534_v8 = vmul.f32 %v2799_v52, %v508_v6  ;;  %v504_v29 = vpop.permute.xlu1 %503  ;;  %v2843_v6 = vrot.slane %v431_v4, %v2619_v24 }
 0x118   : > { %v509_v23 = vsel %vm505_vm10, %v504_v29, %v498_v50  ;;  %v575_v50 = vmul.f32 %v2792_v39, %v547_v45 }
 0x119   : > { %v533_v42 = vmul.f32 %v2808_v51, %v509_v23  ;;  %v423_v31 = vpop.permute.xlu0 %422  ;;  %v813_v55 = vsel %vm367_vm1, %v534_v8, %v756_v2  ;;  %v576_v23 = vmul.f32 %v2805_v54, %v546_v36  ;;  %v746_v2 = vrot.slane %v496_v57, 4 }
 0x11a   : > { %v430_v46 = vsel %vm426_vm9, %v423_v31, %v417_v5  ;;  %v829_v1 = vpack.c.bf16 %v813_v55, %v809_v19 }
 0x11b   : > { %v453_v51 = vmul.f32 %v2811_v20, %v430_v46  ;;  %v502_v63 = vpop.permute.xlu1 %501  ;;  %v812_v19 = vsel %vm367_vm1, %v533_v42, %v755_v28  ;;  %v758_v36 = vrot.slane %v576_v23, 4  ;;  %v840_v46 = vld [vmem:[#allocation5] sm:$0xf] }
 0x11c   : > { %v506_v8 = vsel %vm505_vm10, %v502_v63, %v504_v29  ;;  %v507_v24 = vsel %vm505_vm10, %v500_v60, %v502_v63  ;;  %875 = vmatprep.subr.bf16.mxu0 %v829_v1  ;;  %v757_v60 = vrot.slane %v575_v50, 4  ;;  %v3496_v1 = vmov 0  }
 0x11d   : > { %v535_v30 = vmul.f32 %v2817_v62, %v507_v24  ;;  %v536_v5 = vmul.f32 %v2820_v43, %v506_v8  ;;  %v421_v10 = vpop.permute.xlu0 %420  ;;  %v808_v4 = vsel %vm367_vm1, %v453_v51, %v743_v48 }
 0x11e   : > { %v427_v12 = vsel %vm426_vm9, %v421_v10, %v423_v31  ;;  %v428_v29 = vsel %vm426_vm9, %v2756_v58, %v421_v10  ;;  %v828_v15 = vpack.c.bf16 %v812_v19, %v808_v4 }
 0x11f   : > { %v455_v45 = vmul.f32 %v2826_v14, %v428_v29  ;;  %v456_v55 = vmul.f32 %v2843_v6, %v427_v12  ;;  %v815_v42 = vsel %vm367_vm1, %v536_v5, %v758_v36  ;;  %v814_v28 = vsel %vm367_vm1, %v535_v30, %v757_v60 }
 0x120   : > { %876 = vmatpush1.bf16.msra.mxu0 %v828_v15  ;;  %v2968_v60 = vcombine.high %v2508_v0, %v2508_v0  ;;  %v368_v36 = vsel %vm367_vm1, %v2508_v0, 0.0 }
 0x121   : > { %v811_v51 = vsel %vm367_vm1, %v456_v55, %v746_v2  ;;  %v810_v31 = vsel %vm367_vm1, %v455_v45, %v745_v59 }
 0x122   : > { %v831_v57 = vpack.c.bf16 %v815_v42, %v811_v51  ;;  %v830_v58 = vpack.c.bf16 %v814_v28, %v810_v31  ;;  %3500 = vst [vmem:[#allocation24_spill] sm:$0xff] %v2968_v60  ;;  %v369_v45 = vsel %vm367_vm1, %v2968_v60, 0.0 }
 0x123   : > { %1999 = vmatmul.mubr.msk.bf16.vlgmr.msra.gmra.mxu0 %vm841_vm11, %v840_v46  ;;  %v370_v55 = vadd.f32 %v369_v45, %v368_v36 }
 0x124   : > { %916 = vmatprep.subr.bf16.mxu1 %v831_v57  ;;  %1211 = vmatprep.mubr.bf16.mxu0 %v3496_v1 }
 0x125   : > { %917 = vmatpush1.bf16.msra.mxu1 %v830_v58 }
 0x128   : > { %2000 = vmatmul.mubr.msk.bf16.vlgmr.msra.gmra.mxu1 %vm841_vm11, %v840_v46 }
 0x129   : > { %1252 = vmatprep.mubr.bf16.mxu1 %v3496_v1 }
 0x1e3   : > { %v2874_v48 = vpop.f32.mrf.mxu0 }
 0x1e4   : > { %vm943_vm12 = vcmp.gt.f32.partialorder %v2874_v48, 0.0  ;;  %v947_v50 = vmul.f32 0.1, %v2874_v48 }
 0x1e5   : > { %v2878_v23 = vpop.f32.mrf.mxu0 }
 0x1e6   : > { %3497 = vst [vmem:[#allocation21_spill] sm:$0xff] %v2878_v23  ;;  %v2881_v63 = vsel %vm943_vm12, %v2874_v48, %v947_v50  ;;  %v948_v4 = vmul.f32 0.1, %v2878_v23  ;;  %vm944_vm13 = vcmp.gt.f32.partialorder %v2878_v23, 0.0 }
 0x1e7   : > { %1051 = vrot.lane.b32.xlu1 %v2881_v63, %s2299_s14  ;;  %1067 = vrot.lane.b32.xlu0 %v2881_v63, %s2297_s11  ;;  %v899_v59 = vpop.f32.mrf.mxu0 }
 0x1e8   : > { %v2887_v8 = vpop.f32.mrf.mxu1  ;;  %v2908_v2 = vsel %vm944_vm13, %v2878_v23, %v948_v4 }
 0x1e9   : > { %3498 = vst [vmem:[#allocation22_spill] sm:$0xff] %v2887_v8  ;;  %v900_v24 = vpop.f32.mrf.mxu0  ;;  %v949_v19 = vmul.f32 0.1, %v2887_v8  ;;  %vm945_vm14 = vcmp.gt.f32.partialorder %v2887_v8, 0.0 }
 0x1ea   : > { %v2889_v30 = vpop.f32.mrf.mxu1 }
 0x1eb   : > { %3499 = vst [vmem:[#allocation23_spill] sm:$0xff] %v2889_v30  ;;  %971 = vrot.lane.b32.xlu1 %v2881_v63, %s2301_s17  ;;  %1019 = vrot.lane.b32.xlu0 %v2881_v63, %s2298_s13  ;;  %v2911_v12 = vsel %vm945_vm14, %v2887_v8, %v949_v19  ;;  %v950_v29 = vmul.f32 0.1, %v2889_v30  ;;  %vm946_vm15 = vcmp.gt.f32.partialorder %v2889_v30, 0.0 }
 0x1ec   : > { %v940_v5 = vpop.f32.mrf.mxu1 }
 0x1ed   : > { %v2940_v15 = vsel %vm946_vm15, %v2889_v30, %v950_v29  ;;  %vm1290_vm15 = vcmask 31744  }
 0x1ee   : > { %v941_v10 = vpop.f32.mrf.mxu1 }
 0x1ef   : > { %1003 = vrot.lane.b32.xlu1 %v2881_v63, %s2302_s21  ;;  %1035 = vrot.lane.b32.xlu0 %v2881_v63, %s2300_s16 }
 0x1f3   : > { %987 = vrot.lane.b32.xlu1 %v2881_v63, %s2304_s26  ;;  %955 = vrot.lane.b32.xlu0 %v2881_v63, %s2303_s25 }
 0x1f7   : > { %1069 = vrot.lane.b32.xlu0 %v2908_v2, %s2297_s11  ;;  %1071 = vrot.lane.b32.xlu1 %v2911_v12, %s2297_s11 }
 0x1fb   : > { %1021 = vrot.lane.b32.xlu0 %v2908_v2, %s2298_s13  ;;  %1023 = vrot.lane.b32.xlu1 %v2911_v12, %s2298_s13 }
 0x1ff   : > { %1053 = vrot.lane.b32.xlu0 %v2908_v2, %s2299_s14  ;;  %1055 = vrot.lane.b32.xlu1 %v2911_v12, %s2299_s14 }
 0x203   : > { %1039 = vrot.lane.b32.xlu0 %v2911_v12, %s2300_s16  ;;  %1037 = vrot.lane.b32.xlu1 %v2908_v2, %s2300_s16 }
 0x207   : > { %973 = vrot.lane.b32.xlu0 %v2908_v2, %s2301_s17  ;;  %957 = vrot.lane.b32.xlu1 %v2908_v2, %s2303_s25 }
 0x20b   : > { %1005 = vrot.lane.b32.xlu0 %v2908_v2, %s2302_s21  ;;  %1007 = vrot.lane.b32.xlu1 %v2911_v12, %s2302_s21 }
 0x20f   : > { %975 = vrot.lane.b32.xlu0 %v2911_v12, %s2301_s17  ;;  %1073 = vrot.lane.b32.xlu1 %v2940_v15, %s2297_s11 }
 0x213   : > { %989 = vrot.lane.b32.xlu0 %v2908_v2, %s2304_s26  ;;  %1057 = vrot.lane.b32.xlu1 %v2940_v15, %s2299_s14 }
 0x217   : > { %1025 = vrot.lane.b32.xlu0 %v2940_v15, %s2298_s13  ;;  %1041 = vrot.lane.b32.xlu1 %v2940_v15, %s2300_s16 }
 0x21b   : > { %977 = vrot.lane.b32.xlu0 %v2940_v15, %s2301_s17  ;;  %1009 = vrot.lane.b32.xlu1 %v2940_v15, %s2302_s21 }
 0x21f   : > { %961 = vrot.lane.b32.xlu0 %v2940_v15, %s2303_s25  ;;  %993 = vrot.lane.b32.xlu1 %v2940_v15, %s2304_s26 }
 0x223   : > { %959 = vrot.lane.b32.xlu0 %v2911_v12, %s2303_s25  ;;  %991 = vrot.lane.b32.xlu1 %v2911_v12, %s2304_s26 }
 0x242   : > { %371 = vadd.xlane.f32.xlu0 %v370_v55 }
 0x259   : > { %v2974_v46 = vpop.permute.xlu1 %1051  ;;  %v1068_v51 = vpop.permute.xlu0 %1067 }
 0x25d   : > { %v2976_v42 = vpop.permute.xlu1 %971  ;;  %v2978_v31 = vpop.permute.xlu0 %1019 }
 0x261   : > { %v2980_v28 = vpop.permute.xlu1 %1003  ;;  %v2982_v57 = vpop.permute.xlu0 %1035 }
 0x265   : > { %v2984_v58 = vpop.permute.xlu1 %987  ;;  %v2986_v50 = vpop.permute.xlu0 %955 }
 0x269   : > { %v1072_v59 = vpop.permute.xlu1 %1071  ;;  %v1070_v24 = vpop.permute.xlu0 %1069 }
 0x26a   : > { %v1076_v5 = vsel %vm705_vm0, %v1070_v24, %v1072_v59  ;;  %v1077_v10 = vsel %vm705_vm0, %v1068_v51, %v1070_v24 }
 0x26b   : > { %v1079_v4 = vmul.f32 %v1077_v10, %v2599_v13  ;;  %v1080_v19 = vmul.f32 %v1076_v5, %v2613_v21 }
 0x26d   : > { %v1147_v29 = vsel %vm367_vm1, %v1079_v4, %v2607_v18  ;;  %v2996_v36 = vpop.permute.xlu1 %1023  ;;  %v1022_v45 = vpop.permute.xlu0 %1021  ;;  %v1148_v55 = vsel %vm367_vm1, %v1080_v19, %v2622_v25 }
 0x26e   : > { %v1159_v60 = vpack.c.bf16 %v1147_v29, %v1147_v29  ;;  %v1028_v30 = vsel %vm585_vm4, %v1022_v45, %v2996_v36  ;;  %v1029_v13 = vsel %vm585_vm4, %v2978_v31, %v1022_v45  ;;  %v1160_v24 = vpack.c.bf16 %v1148_v55, %v1148_v55 }
 0x26f   : > { %v1031_v5 = vmul.f32 %v1029_v13, %v2679_v11  ;;  %v1032_v10 = vmul.f32 %v1028_v30, %v2663_v56 }
 0x270   : > { %v1171_v21 = vand.u32 %v1160_v24, %v2641_v38  ;;  %v1168_v18 = vand.u32 %v1159_v60, %v2641_v38 }
 0x271   : > { %v1056_v4 = vpop.permute.xlu1 %1055  ;;  %v1054_v25 = vpop.permute.xlu0 %1053  ;;  %v1111_v60 = vrot.slane %v1031_v5, 4  ;;  %v1112_v24 = vrot.slane %v1032_v10, 4 }
 0x272   : > { %v1060_v19 = vsel %vm665_vm5, %v1054_v25, %v1056_v4  ;;  %v1061_v29 = vsel %vm665_vm5, %v2974_v46, %v1054_v25  ;;  %1189 = vmatprep.subr.bf16.mxu0 %v1171_v21 }
 0x273   : > { %v1063_v45 = vmul.f32 %v1061_v29, %v2685_v17  ;;  %v1064_v55 = vmul.f32 %v1060_v19, %v2672_v61  ;;  %1190 = vmatpush1.bf16.msra.mxu0 %v1168_v18  ;;  %v1139_v61 = vsel %vm367_vm1, %v2881_v63, %v1111_v60  ;;  %v1140_v25 = vsel %vm367_vm1, %v2908_v2, %v1112_v24 }
 0x275   : > { %v1038_v11 = vpop.permute.xlu1 %1037  ;;  %v1040_v13 = vpop.permute.xlu0 %1039  ;;  %v1123_v8 = vrot.slane %v1063_v45, 4  ;;  %v1124_v23 = vrot.slane %v1064_v55, 4 }
 0x276   : > { %v1045_v56 = vsel %vm625_vm6, %v2982_v57, %v1038_v11  ;;  %v1044_v30 = vsel %vm625_vm6, %v1038_v11, %v1040_v13 }
 0x277   : > { %v1047_v21 = vmul.f32 %v1045_v56, %v2707_v44  ;;  %v1048_v17 = vmul.f32 %v1044_v30, %v2689_v22 }
 0x279   : > { %v1143_v18 = vsel %vm367_vm1, %v1047_v21, %v1123_v8  ;;  %v3027_v5 = vpop.permute.xlu1 %957  ;;  %v974_v10 = vpop.permute.xlu0 %973  ;;  %v1144_v19 = vsel %vm367_vm1, %v1048_v17, %v1124_v23 }
 0x27a   : > { %v1156_v29 = vpack.c.bf16 %v1144_v19, %v1140_v25  ;;  %v1155_v45 = vpack.c.bf16 %v1143_v18, %v1139_v61  ;;  %v981_v22 = vsel %vm465_vm7, %v2976_v42, %v974_v10  ;;  %v965_v21 = vsel %vm426_vm9, %v2986_v50, %v3027_v5 }
 0x27b   : > { %v984_v24 = vmul.f32 %v981_v22, %v2761_v53 }
 0x27c   : > { %1191 = vmatprep.subr.bf16.mxu0 %v1156_v29 }
 0x27d   : > { %v1008_v55 = vpop.permute.xlu1 %1007  ;;  %1192 = vmatpush1.bf16.msra.mxu0 %v1155_v45  ;;  %v1006_v44 = vpop.permute.xlu0 %1005 }
 0x27e   : > { %v1013_v63 = vsel %vm545_vm8, %v2980_v28, %v1006_v44  ;;  %v1012_v29 = vsel %vm545_vm8, %v1006_v44, %v1008_v55 }
 0x27f   : > { %v1016_v11 = vmul.f32 %v1013_v63, %v2767_v3 }
 0x281   : > { %v1074_v8 = vpop.permute.xlu1 %1073  ;;  %v976_v60 = vpop.permute.xlu0 %975  ;;  %v1100_v18 = vrot.slane %v1016_v11, 4  ;;  %v1017_v11 = vmul.f32 %v1012_v29, %v2792_v39 }
 0x282   : > { %v1075_v2 = vsel %vm705_vm0, %v1072_v59, %v1074_v8  ;;  %v1078_v23 = vsel %vm705_vm0, %v1074_v8, %v1068_v51 }
 0x283   : > { %v1081_v56 = vmul.f32 %v1075_v2, %v2634_v33  ;;  %v1082_v30 = vmul.f32 %v1078_v23, %v2637_v34 }
 0x285   : > { %v1149_v17 = vsel %vm367_vm1, %v1081_v56, %v2647_v41  ;;  %v1058_v59 = vpop.permute.xlu1 %1057  ;;  %v3052_v61 = vpop.permute.xlu0 %989  ;;  %v1150_v53 = vsel %vm367_vm1, %v1082_v30, %v2644_v40  ;;  %v1088_v41 = vrot.slane %v984_v24, 4  ;;  %v968_v40 = vmul.f32 %v965_v21, %v2779_v26  ;;  %v3501_v56 = vld [vmem:[#allocation18_spill] sm:$0xff] }
 0x286   : > { %v1161_v51 = vpack.c.bf16 %v1149_v17, %v1149_v17  ;;  %v1059_v33 = vsel %vm665_vm5, %v1056_v4, %v1058_v59  ;;  %v1062_v34 = vsel %vm665_vm5, %v1058_v59, %v2974_v46  ;;  %v997_v3 = vsel %vm505_vm10, %v2984_v58, %v3052_v61 }
 0x287   : > { %v1000_v25 = vmul.f32 %v997_v3, %v2799_v52  ;;  %v1162_v19 = vpack.c.bf16 %v1150_v53, %v1150_v53  ;;  %v1065_v45 = vmul.f32 %v1059_v33, %v2715_v47  ;;  %v1066_v46 = vmul.f32 %v1062_v34, %v2718_v49  ;;  %v3502_v3 = vld [vmem:[#allocation19_spill] sm:$0xff] }
 0x288   : > { %v1174_v4 = vand.u32 %v1161_v51, %v2641_v38 }
 0x289   : > { %v1042_v22 = vpop.permute.xlu1 %1041  ;;  %v1026_v63 = vpop.permute.xlu0 %1025  ;;  %v1177_v8 = vand.u32 %v1162_v19, %v2641_v38  ;;  %v1136_v2 = vsel %vm367_vm1, %v1000_v25, %v1100_v18  ;;  %v1125_v21 = vrot.slane %v1065_v45, 4 }
 0x28a   : > { %v1043_v52 = vsel %vm625_vm6, %v1040_v13, %v1042_v22  ;;  %v1046_v26 = vsel %vm625_vm6, %v1042_v22, %v2982_v57  ;;  %v1027_v44 = vsel %vm585_vm4, %v2996_v36, %v1026_v63  ;;  %v1030_v47 = vsel %vm585_vm4, %v1026_v63, %v2978_v31 }
 0x28b   : > { %v1049_v49 = vmul.f32 %v1043_v52, %v2734_v7  ;;  %v1033_v23 = vmul.f32 %v1027_v44, %v2695_v32  ;;  %v1034_v24 = vmul.f32 %v1030_v47, %v2698_v35  ;;  %1230 = vmatprep.subr.bf16.mxu1 %v1177_v8  ;;  %v1132_v13 = vsel %vm367_vm1, %v968_v40, %v1088_v41 }
 0x28c   : > { %v980_v57 = vsel %vm465_vm7, %v974_v10, %v976_v60  ;;  %v1050_v36 = vmul.f32 %v1046_v26, %v3501_v56  ;;  %1231 = vmatpush1.bf16.msra.mxu1 %v1174_v4  ;;  %v1152_v30 = vpack.c.bf16 %v1136_v2, %v1132_v13  ;;  %v1126_v31 = vrot.slane %v1066_v46, 4  ;;  %v3503_v4 = vld [vmem:[#allocation20_spill] sm:$0xff] }
 0x28d   : > { %v1113_v17 = vrot.slane %v1033_v23, 4  ;;  %v1114_v7 = vrot.slane %v1034_v24, 4  ;;  %v1010_v59 = vpop.permute.xlu1 %1009  ;;  %v978_v32 = vpop.permute.xlu0 %977  ;;  %v1145_v51 = vsel %vm367_vm1, %v1049_v49, %v1125_v21  ;;  %v985_v41 = vmul.f32 %v980_v57, %v2782_v27 }
 0x28e   : > { %1193 = vmatprep.subr.bf16.mxu0 %v1152_v30  ;;  %v1011_v35 = vsel %vm545_vm8, %v1008_v55, %v1010_v59  ;;  %v1014_v39 = vsel %vm545_vm8, %v1010_v59, %v2980_v28  ;;  %v979_v10 = vsel %vm465_vm7, %v976_v60, %v978_v32  ;;  %v982_v53 = vsel %vm465_vm7, %v978_v32, %v2976_v42  ;;  %v3504_v30 = vld [vmem:[#allocation15_spill] sm:$0xff] }
 0x28f   : > { %v1141_v33 = vsel %vm367_vm1, %v2911_v12, %v1113_v17  ;;  %v1015_v34 = vmul.f32 %v1014_v39, %v2773_v16  ;;  %v983_v55 = vmul.f32 %v982_v53, %v3502_v3  ;;  %v1142_v28 = vsel %vm367_vm1, %v2940_v15, %v1114_v7 }
 0x290   : > { %v1146_v60 = vsel %vm367_vm1, %v1050_v36, %v1126_v31  ;;  %v1157_v18 = vpack.c.bf16 %v1145_v51, %v1141_v33  ;;  %v1018_v25 = vmul.f32 %v1011_v35, %v2805_v54  ;;  %v986_v42 = vmul.f32 %v979_v10, %v2789_v37 }
 0x291   : > { %v994_v19 = vpop.permute.xlu1 %993  ;;  %v962_v40 = vpop.permute.xlu0 %961  ;;  %v1158_v29 = vpack.c.bf16 %v1146_v60, %v1142_v28  ;;  %v1099_v12 = vrot.slane %v1015_v34, 4  ;;  %v1087_v15 = vrot.slane %v983_v55, 4  ;;  %v1101_v54 = vrot.slane %v1017_v11, 4 }
 0x292   : > { %v998_v16 = vsel %vm505_vm10, %v994_v19, %v2984_v58  ;;  %v966_v27 = vsel %vm426_vm9, %v962_v40, %v2986_v50  ;;  %v1089_v37 = vrot.slane %v985_v41, 4  ;;  %v1102_v22 = vrot.slane %v1018_v25, 4 }
 0x293   : > { %v999_v45 = vmul.f32 %v998_v16, %v3503_v4  ;;  %v967_v46 = vmul.f32 %v966_v27, %v2811_v20  ;;  %1232 = vmatprep.subr.bf16.mxu1 %v1158_v29  ;;  %v1090_v63 = vrot.slane %v986_v42, 4 }
 0x294   : > { %1233 = vmatpush1.bf16.msra.mxu1 %v1157_v18 }
 0x295   : > { %v1135_v8 = vsel %vm367_vm1, %v999_v45, %v1099_v12  ;;  %v1131_v58 = vsel %vm367_vm1, %v967_v46, %v1087_v15  ;;  %v992_v2 = vpop.permute.xlu1 %991  ;;  %v960_v52 = vpop.permute.xlu0 %959  ;;  %v1277_v46 = vld [vmem:[#allocation7] sm:$0x3] }
 0x296   : > { %v995_v50 = vsel %vm505_vm10, %v992_v2, %v994_v19  ;;  %v996_v26 = vsel %vm505_vm10, %v3052_v61, %v992_v2  ;;  %v963_v20 = vsel %vm426_vm9, %v960_v52, %v962_v40  ;;  %v964_v44 = vsel %vm426_vm9, %v3027_v5, %v960_v52  ;;  %v1388_v52 = vld [vmem:[#allocation8 + $0x21] ss:$8 sm:$0x3] }
 0x297   : > { %v1001_v47 = vmul.f32 %v996_v26, %v2817_v62  ;;  %v1002_v49 = vmul.f32 %v995_v50, %v2820_v43  ;;  %v969_v23 = vmul.f32 %v964_v44, %v2826_v14  ;;  %v970_v24 = vmul.f32 %v963_v20, %v2843_v6  ;;  %v1163_v62 = vld [vmem:[%s3444_s2] sm:$0x3]  ;;  %v3505_v44 = vld [vmem:[#allocation21_spill] sm:$0xff] }
 0x298   : > { %v1151_v13 = vpack.c.bf16 %v1135_v8, %v1131_v58  ;;  %v2307_v14 = vmov 839922192   ;;  %v1282_v2 = vrot.slane %v2874_v48, 4 }
 0x299   : > { %v1137_v11 = vsel %vm367_vm1, %v1001_v47, %v1101_v54  ;;  %v1133_v61 = vsel %vm367_vm1, %v969_v23, %v1089_v37  ;;  %v1134_v57 = vsel %vm367_vm1, %v970_v24, %v1090_v63  ;;  %v1138_v56 = vsel %vm367_vm1, %v1002_v49, %v1102_v22  ;;  %v3506_v23 = vld [vmem:[#allocation22_spill] sm:$0xff] }
 0x29a   : > { %1194 = vmatpush1.bf16.msra.mxu0 %v1151_v13  ;;  %v1154_v5 = vpack.c.bf16 %v1138_v56, %v1134_v57  ;;  %v1153_v43 = vpack.c.bf16 %v1137_v11, %v1133_v61  ;;  %v377_v6 = vunpack.c.l.s4 %v2307_v14  ;;  %v1283_v47 = vrot.slane %v3505_v44, 4  ;;  %v3507_v13 = vld [vmem:[#allocation16_spill] sm:$0xff]  ;;  %v3509_v14 = vld [vmem:[#allocation17_spill] sm:$0xff] }
 0x29b   : > { %v1284_v24 = vrot.slane %v3506_v23, 4  ;;  %v3163_v11 = vrot.slane %v1388_v52, %v3507_v13 }
 0x29c   : > { %1234 = vmatprep.subr.bf16.mxu1 %v1154_v5  ;;  %v378_v36 = vunpack.c.0.s8 %v377_v6  ;;  %v3167_v6 = vrot.slane %v1388_v52, %v3509_v14 }
 0x29d   : > { %2001 = vmatmul.mubr.msk.bf16.vlgmr.msra.gmra.mxu0 %vm841_vm11, %v1163_v62  ;;  %1235 = vmatpush1.bf16.msra.mxu1 %v1153_v43  ;;  %v3508_v43 = vld [vmem:[#allocation23_spill] sm:$0xff] }
 0x29e   : > { %1338 = vmatprep.mubr.bf16.mxu0 %v3496_v1  ;;  %v381_v21 = vsub.s32 %v378_v36, %v3504_v30  ;;  %v1285_v48 = vrot.slane %v3508_v43, 4 }
 0x2a0   : > { %2002 = vmatmul.mubr.msk.bf16.vlgmr.msra.gmra.mxu1 %vm841_vm11, %v1163_v62 }
 0x2a1   : > { %1379 = vmatprep.mubr.bf16.mxu1 %v3496_v1 }
 0x2cb   : > { %v372_v31 = vpop.xlane.xlu0 %371 }
 0x2cc   : > { %v374_v17 = vmul.f32 0.00390625, %v372_v31 }
 0x2ce   : > { %v382_v7 = vrot.slane %v374_v17, %v381_v21 }
 0x2d0   : > { %v384_v59 = vsub.f32 %v2508_v0, %v382_v7 }
 0x2d2   : > { %v385_v32 = vmul.f32 %v384_v59, %v384_v59 }
 0x2d4   : > { %v387_v35 = vcombine.high %v385_v32, %v385_v32  ;;  %v389_v39 = vsel %vm367_vm1, %v385_v32, 0.0  ;;  %v3510_v32 = vmov 65535  }
 0x2d6   : > { %v390_v10 = vsel %vm367_vm1, %v387_v35, 0.0 }
 0x2d7   : > { %v391_v53 = vadd.f32 %v390_v10, %v389_v39 }
 0x2d9   : > { %392 = vadd.xlane.f32.xlu1 %v391_v53 }
 0x35d   : > { %v1213_v51 = vpop.f32.mrf.mxu0 }
 0x35e   : > { %vm1261_vm3 = vcmp.gt.f32.partialorder %v1213_v51, 0.0  ;;  %v1265_v33 = vmul.f32 0.1, %v1213_v51 }
 0x35f   : > { %v1215_v34 = vpop.f32.mrf.mxu0 }
 0x360   : > { %v1269_v3 = vsel %vm1261_vm3, %v1213_v51, %v1265_v33  ;;  %vm1262_vm12 = vcmp.gt.f32.partialorder %v1215_v34, 0.0  ;;  %v1266_v55 = vmul.f32 0.1, %v1215_v34  ;;  %v1254_v41 = vpop.f32.mrf.mxu1  ;;  %vm1421_vm3 = vcmask 1046528  }
 0x361   : > { %v1273_v28 = vpack.c.bf16 %v1269_v3, %v1269_v3  ;;  %v1217_v60 = vpop.f32.mrf.mxu0  ;;  %vm1263_vm13 = vcmp.gt.f32.partialorder %v1254_v41, 0.0  ;;  %v1267_v0 = vmul.f32 0.1, %v1254_v41 }
 0x362   : > { %v1270_v18 = vsel %vm1262_vm12, %v1215_v34, %v1266_v55  ;;  %v1256_v25 = vpop.f32.mrf.mxu1  ;;  %v393_v37 = vpop.xlane.xlu1 %392  ;;  %vm1416_vm12 = vcmask 105472  }
 0x363   : > { %v1274_v42 = vpack.c.bf16 %v1270_v18, %v1270_v18  ;;  %v1271_v19 = vsel %vm1263_vm13, %v1254_v41, %v1267_v0  ;;  %v1218_v40 = vpop.f32.mrf.mxu0  ;;  %vm1264_vm14 = vcmp.gt.f32.partialorder %v1256_v25, 0.0  ;;  %v1268_v29 = vmul.f32 0.1, %v1256_v25 }
 0x364   : > { %v1275_v16 = vpack.c.bf16 %v1271_v19, %v1271_v19  ;;  %v1258_v27 = vpop.f32.mrf.mxu1  ;;  %v1295_v12 = vsel %vm845_vm2, %v1273_v28, 0  ;;  %v394_v22 = vmul.f32 0.00390625, %v393_v37  ;;  %v1415_v28 = vld [vmem:[%s3446_s4] sm:$0xf]  ;;  %vm1646_vm13 = vcmask 1044480  }
 0x365   : > { %v1272_v15 = vsel %vm1264_vm14, %v1256_v25, %v1268_v29  ;;  %2003 = vmatprep.subr.msk.bf16.mxu0 %vm845_vm2, %v1274_v42  ;;  %vm1642_vm14 = vcmask 596992  }
 0x366   : > { %v1276_v4 = vpack.c.bf16 %v1272_v15, %v1272_v15  ;;  %1321 = vmatpush1.bf16.msra.mxu0 %v1295_v12  ;;  %v1259_v45 = vpop.f32.mrf.mxu1  ;;  %v1301_v54 = vsel %vm845_vm2, %v1275_v16, 0  ;;  %v395_v63 = vadd.f32 1e-05, %v394_v22  ;;  %v1647_v16 = vsel %vm367_vm1, 4294967295, %v3510_v32 }
 0x367   : > { %v1648_v37 = vsel %vm1646_vm13, %v1647_v16, 0 }
 0x368   : > { %2005 = vmatprep.subr.msk.bf16.mxu1 %vm845_vm2, %v1276_v4  ;;  %2108 = vrsqrt.f32 %v395_v63  ;;  %vm1420_vm2 = vcmask 1045504  }
 0x369   : > { %2004 = vmatmul.mubr.msk.bf16.vlgmr.msra.gmra.mxu0 %vm1290_vm15, %v1277_v46  ;;  %1362 = vmatpush1.bf16.msra.mxu1 %v1301_v54  ;;  %v1422_v35 = vsel %vm1420_vm2, 4294967295, %v3510_v32  ;;  %v1597_v54 = vld [vmem:[#allocation8 + $0x7] ss:$8 sm:$0x3] }
 0x36a   : > { %1462 = vmatprep.mubr.bf16.mxu0 %v3496_v1  ;;  %v1423_v3 = vsel %vm1421_vm3, %v1422_v35, 0 }
 0x36c   : > { %2006 = vmatmul.mubr.msk.bf16.vlgmr.msra.gmra.mxu1 %vm1290_vm15, %v1277_v46  ;;  %v1577_v46 = vld [vmem:[#allocation8 + $0x6] ss:$8 sm:$0x3] }
 0x36d   : > { %1687 = vmatprep.mubr.bf16.mxu1 %v3496_v1 }
 0x375   : > { %v2109_v8 = vpop.eup %2108 }
 0x376   : > { %v404_v58 = vrot.slane %v2109_v8, %v381_v21 }
 0x378   : > { %v406_v26 = vmul.f32 %v404_v58, %v384_v59  ;;  %v3233_v58 = vrot.slane %v1577_v46, %v3507_v13 }
 0x37a   : > { %v1390_v36 = vcombine.high %v406_v26, %v406_v26 }
 0x429   : > { %v1340_v50 = vpop.f32.mrf.mxu0 }
 0x42a   : > { %v1341_v20 = vadd.f32 %v1340_v50, %v1282_v2  ;;  %v3236_v2 = vrot.slane %v1577_v46, %v3509_v14  ;;  %v3239_v50 = vrot.slane %v1597_v54, %v3507_v13 }
 0x42b   : > { %v1342_v49 = vpop.f32.mrf.mxu0 }
 0x42c   : > { %v1394_v61 = vrot.slane %v1341_v20, 4  ;;  %v1343_v57 = vadd.f32 %v1342_v49, %v1283_v47  ;;  %v1381_v56 = vpop.f32.mrf.mxu1  ;;  %v1557_v47 = vld [vmem:[#allocation8 + $0x5] ss:$8 sm:$0x3] }
 0x42d   : > { %v1344_v62 = vpop.f32.mrf.mxu0  ;;  %v1382_v5 = vadd.f32 %v1381_v56, %v1284_v24  ;;  %v3253_v56 = vrot.slane %v1557_v47, %v3507_v13 }
 0x42e   : > { %v1395_v30 = vrot.slane %v1343_v57, 4  ;;  %v1383_v21 = vpop.f32.mrf.mxu1  ;;  %v1409_v31 = vsel %vm367_vm1, %v406_v26, %v1394_v61  ;;  %v3242_v26 = vrot.slane %v1597_v54, %v3509_v14  ;;  %v3256_v62 = vrot.slane %v1557_v47, %v3509_v14 }
 0x42f   : > { %v1411_v17 = vsel %vm367_vm1, %v1382_v5, %v3163_v11  ;;  %v1345_v7 = vpop.f32.mrf.mxu0  ;;  %v1384_v59 = vadd.f32 %v1383_v21, %v1285_v48 }
 0x430   : > { %v1413_v39 = vpack.c.bf16 %v1411_v17, %v1409_v31  ;;  %v1385_v10 = vpop.f32.mrf.mxu1  ;;  %v1410_v53 = vsel %vm367_vm1, %v1390_v36, %v1395_v30 }
 0x431   : > { %v1412_v51 = vsel %vm367_vm1, %v1384_v59, %v3167_v6  ;;  %v1517_v10 = vld [vmem:[#allocation8 + $0x2] ss:$8 sm:$0x3] }
 0x432   : > { %v1386_v33 = vpop.f32.mrf.mxu1  ;;  %v1414_v34 = vpack.c.bf16 %v1412_v51, %v1410_v53  ;;  %v1425_v41 = vand.u32 %v1423_v3, %v1413_v39  ;;  %v1537_v53 = vld [vmem:[#allocation8 + $0x3] ss:$8 sm:$0x3] }
 0x434   : > { %v1428_v55 = vand.u32 %v1423_v3, %v1414_v34  ;;  %v3271_v3 = vrot.slane %v1517_v10, %v3507_v13 }
 0x436   : > { %1444 = vmatprep.subr.bf16.mxu0 %v1428_v55  ;;  %v3274_v55 = vrot.slane %v1517_v10, %v3509_v14 }
 0x437   : > { %1445 = vmatpush1.bf16.msra.mxu0 %v1425_v41 }
 0x43a   : > { %2007 = vmatmul.mubr.msk.bf16.vlgmr.msra.gmra.mxu0 %vm1416_vm12, %v1415_v28  ;;  %v3277_v28 = vrot.slane %v1537_v53, %v3507_v13 }
 0x43b   : > { %1848 = vmatprep.mubr.bf16.mxu0 %v3496_v1  ;;  %v1617_v1 = vld [vmem:[#allocation8 + $0x20] ss:$8 sm:$0x3] }
 0x43c   : > { %v3217_v19 = vrot.slane %v1617_v1, %v3507_v13  ;;  %v3220_v40 = vrot.slane %v1617_v1, %v3509_v14 }
 0x4fa   : > { %v3180_v60 = vpop.f32.mrf.mxu0 }
 0x4fb   : > { %1611 = vrot.lane.b32.xlu0 %v3180_v60, %s2297_s11 }
 0x4fc   : > { %v3184_v0 = vpop.f32.mrf.mxu0 }
 0x4fd   : > { %1613 = vrot.lane.b32.xlu1 %v3184_v0, %s2297_s11 }
 0x4fe   : > { %v1468_v18 = vpop.f32.mrf.mxu0 }
 0x4ff   : > { %1571 = vrot.lane.b32.xlu0 %v3180_v60, %s2300_s16  ;;  %v3280_v18 = vrot.slane %v1537_v53, %v3509_v14 }
 0x500   : > { %v1469_v25 = vpop.f32.mrf.mxu0 }
 0x501   : > { %1573 = vrot.lane.b32.xlu1 %v3184_v0, %s2300_s16 }
 0x503   : > { %1591 = vrot.lane.b32.xlu0 %v3180_v60, %s2299_s14 }
 0x505   : > { %1593 = vrot.lane.b32.xlu1 %v3184_v0, %s2299_s14 }
 0x507   : > { %1551 = vrot.lane.b32.xlu0 %v3180_v60, %s2298_s13 }
 0x509   : > { %1553 = vrot.lane.b32.xlu1 %v3184_v0, %s2298_s13 }
 0x50b   : > { %1511 = vrot.lane.b32.xlu0 %v3180_v60, %s2304_s26 }
 0x50d   : > { %1513 = vrot.lane.b32.xlu1 %v3184_v0, %s2304_s26 }
 0x50f   : > { %1531 = vrot.lane.b32.xlu0 %v3180_v60, %s2302_s21 }
 0x511   : > { %1533 = vrot.lane.b32.xlu1 %v3184_v0, %s2302_s21 }
 0x513   : > { %1471 = vrot.lane.b32.xlu0 %v3180_v60, %s2303_s25 }
 0x515   : > { %1473 = vrot.lane.b32.xlu1 %v3184_v0, %s2303_s25 }
 0x517   : > { %1491 = vrot.lane.b32.xlu0 %v3180_v60, %s2301_s17 }
 0x519   : > { %1493 = vrot.lane.b32.xlu1 %v3184_v0, %s2301_s17 }
 0x56d   : > { %v1612_v42 = vpop.permute.xlu0 %1611 }
 0x56f   : > { %v1614_v29 = vpop.permute.xlu1 %1613 }
 0x570   : > { %v1615_v27 = vsel %vm705_vm0, %v1612_v42, %v1614_v29  ;;  %v1616_v12 = vsel %vm705_vm0, %v1614_v29, %v1612_v42 }
 0x571   : > { %v1629_v15 = vmul.f32 %v3217_v19, %v1615_v27  ;;  %v1630_v4 = vmul.f32 %v3220_v40, %v1616_v12  ;;  %v1572_v45 = vpop.permute.xlu0 %1571 }
 0x573   : > { %v1639_v22 = vpack.c.bf16 %v3163_v11, %v1629_v15  ;;  %v1640_v63 = vpack.c.bf16 %v3167_v6, %v1630_v4  ;;  %v1574_v8 = vpop.permute.xlu1 %1573  ;;  %v1477_v4 = vld [vmem:[#allocation8] ss:$8 sm:$0x3] }
 0x574   : > { %v1575_v49 = vsel %vm625_vm6, %v1572_v45, %v1574_v8  ;;  %v1576_v23 = vsel %vm625_vm6, %v1574_v8, %v1572_v45  ;;  %v1497_v45 = vld [vmem:[#allocation8 + $0x1] ss:$8 sm:$0x3] }
 0x575   : > { %v1592_v52 = vpop.permute.xlu0 %1591  ;;  %v1650_v20 = vand.u32 %v1648_v37, %v1639_v22  ;;  %v1653_v44 = vand.u32 %v1648_v37, %v1640_v63  ;;  %v1589_v5 = vmul.f32 %v3233_v58, %v1575_v49  ;;  %v1590_v43 = vmul.f32 %v3236_v2, %v1576_v23 }
 0x576   : > { %v3295_v22 = vrot.slane %v1477_v4, %v3507_v13  ;;  %v3298_v63 = vrot.slane %v1477_v4, %v3509_v14  ;;  %v3301_v8 = vrot.slane %v1497_v45, %v3507_v13 }
 0x577   : > { %v1594_v24 = vpop.permute.xlu1 %1593  ;;  %1661 = vmatprep.subr.bf16.mxu1 %v1653_v44 }
 0x578   : > { %v1595_v61 = vsel %vm665_vm5, %v1592_v52, %v1594_v24  ;;  %v1596_v57 = vsel %vm665_vm5, %v1594_v24, %v1592_v52  ;;  %1662 = vmatpush1.bf16.msra.mxu1 %v1650_v20  ;;  %v3304_v52 = vrot.slane %v1497_v45, %v3509_v14 }
 0x579   : > { %v1609_v48 = vmul.f32 %v3239_v50, %v1595_v61  ;;  %v1610_v36 = vmul.f32 %v3242_v26, %v1596_v57  ;;  %v1552_v30 = vpop.permute.xlu0 %1551 }
 0x57b   : > { %v1637_v21 = vpack.c.bf16 %v1609_v48, %v1589_v5  ;;  %v1554_v31 = vpop.permute.xlu1 %1553  ;;  %v1638_v17 = vpack.c.bf16 %v1610_v36, %v1590_v43  ;;  %v1641_v48 = vld [vmem:[%s3447_s5] sm:$0x3] }
 0x57c   : > { %v1555_v7 = vsel %vm585_vm4, %v1552_v30, %v1554_v31  ;;  %v1556_v59 = vsel %vm585_vm4, %v1554_v31, %v1552_v30 }
 0x57d   : > { %v1569_v32 = vmul.f32 %v3253_v56, %v1555_v7  ;;  %v1570_v35 = vmul.f32 %v3256_v62, %v1556_v59  ;;  %v1512_v39 = vpop.permute.xlu0 %1511  ;;  %1663 = vmatprep.subr.bf16.mxu1 %v1638_v17 }
 0x57e   : > { %1664 = vmatpush1.bf16.msra.mxu1 %v1637_v21 }
 0x57f   : > { %v1635_v51 = vpack.c.bf16 %v1569_v32, %v3180_v60  ;;  %v1514_v33 = vpop.permute.xlu1 %1513  ;;  %v1636_v34 = vpack.c.bf16 %v1570_v35, %v3184_v0 }
 0x580   : > { %v1515_v60 = vsel %vm505_vm10, %v1512_v39, %v1514_v33  ;;  %v1516_v0 = vsel %vm505_vm10, %v1514_v33, %v1512_v39 }
 0x581   : > { %v1532_v41 = vpop.permute.xlu0 %1531  ;;  %1665 = vmatprep.subr.bf16.mxu1 %v1636_v34  ;;  %v1529_v29 = vmul.f32 %v3271_v3, %v1516_v0  ;;  %v1530_v16 = vmul.f32 %v3274_v55, %v1515_v60 }
 0x582   : > { %1666 = vmatpush1.bf16.msra.mxu1 %v1635_v51 }
 0x583   : > { %v1534_v25 = vpop.permute.xlu1 %1533 }
 0x584   : > { %v1535_v1 = vsel %vm545_vm8, %v1532_v41, %v1534_v25  ;;  %v1536_v42 = vsel %vm545_vm8, %v1534_v25, %v1532_v41 }
 0x585   : > { %v1549_v27 = vmul.f32 %v3277_v28, %v1536_v42  ;;  %v1550_v12 = vmul.f32 %v3280_v18, %v1535_v1  ;;  %v1472_v15 = vpop.permute.xlu0 %1471 }
 0x587   : > { %v1633_v46 = vpack.c.bf16 %v1549_v27, %v1529_v29  ;;  %v1474_v54 = vpop.permute.xlu1 %1473  ;;  %v1634_v37 = vpack.c.bf16 %v1550_v12, %v1530_v16 }
 0x588   : > { %v1475_v20 = vsel %vm426_vm9, %v1472_v15, %v1474_v54  ;;  %v1476_v44 = vsel %vm426_vm9, %v1474_v54, %v1472_v15 }
 0x589   : > { %1667 = vmatprep.subr.bf16.mxu1 %v1634_v37  ;;  %v1492_v47 = vpop.permute.xlu0 %1491  ;;  %v1489_v13 = vmul.f32 %v3295_v22, %v1476_v44  ;;  %v1490_v14 = vmul.f32 %v3298_v63, %v1475_v20 }
 0x58a   : > { %1668 = vmatpush1.bf16.msra.mxu1 %v1633_v46 }
 0x58b   : > { %v1494_v49 = vpop.permute.xlu1 %1493 }
 0x58c   : > { %v1495_v23 = vsel %vm465_vm7, %v1492_v47, %v1494_v49  ;;  %v1496_v24 = vsel %vm465_vm7, %v1494_v49, %v1492_v47 }
 0x58d   : > { %v1509_v61 = vmul.f32 %v3301_v8, %v1496_v24  ;;  %v1510_v57 = vmul.f32 %v3304_v52, %v1495_v23 }
 0x58f   : > { %v1631_v5 = vpack.c.bf16 %v1509_v61, %v1489_v13  ;;  %v1632_v43 = vpack.c.bf16 %v1510_v57, %v1490_v14 }
 0x591   : > { %1669 = vmatprep.subr.bf16.mxu1 %v1632_v43 }
 0x592   : > { %1670 = vmatpush1.bf16.msra.mxu1 %v1631_v5 }
 0x595   : > { %2008 = vmatmul.mubr.msk.bf16.vlgmr.msra.gmra.mxu1 %vm1642_vm14, %v1641_v48 }
 0x655   : > { %v1689_v36 = vpop.f32.mrf.mxu1 }
 0x656   : > { %vm1696_vm15 = vcmp.gt.f32.partialorder %v1689_v36, 0.0  ;;  %v1698_v30 = vmul.f32 0.1, %v1689_v36 }
 0x657   : > { %v1691_v21 = vpop.f32.mrf.mxu1 }
 0x658   : > { %v1700_v31 = vsel %vm1696_vm15, %v1689_v36, %v1698_v30  ;;  %vm1697_vm2 = vcmp.gt.f32.partialorder %v1691_v21, 0.0  ;;  %v1699_v17 = vmul.f32 0.1, %v1691_v21 }
 0x659   : > { %1758 = vrot.lane.b32.xlu0 %v1700_v31, %s2297_s11  ;;  %v1693_v7 = vpop.f32.mrf.mxu1 }
 0x65a   : > { %v1701_v59 = vsel %vm1697_vm2, %v1691_v21, %v1699_v17 }
 0x65b   : > { %1760 = vrot.lane.b32.xlu1 %v1701_v59, %s2297_s11  ;;  %v1694_v32 = vpop.f32.mrf.mxu1 }
 0x65d   : > { %1734 = vrot.lane.b32.xlu0 %v1700_v31, %s2298_s13 }
 0x65f   : > { %1736 = vrot.lane.b32.xlu1 %v1701_v59, %s2298_s13 }
 0x661   : > { %1750 = vrot.lane.b32.xlu0 %v1700_v31, %s2299_s14 }
 0x663   : > { %1752 = vrot.lane.b32.xlu1 %v1701_v59, %s2299_s14  ;;  %s2016_s14 = sshll.u32 %s2375_s9, 7  ;;  %s2308_s9 = smov [#allocation10]  }
 0x665   : > { %1742 = vrot.lane.b32.xlu0 %v1700_v31, %s2300_s16 }
 0x667   : > { %1744 = vrot.lane.b32.xlu1 %v1701_v59, %s2300_s16  ;;  %s361_s16 = scalar_lea.vmem [#allocation10], %s1994_s22  ;;  %s2221_s22 = sshll.u32 %s2308_s9, 4  ;;  %s2222_s22 = int_to_ptr.vmem [resolvable:$false] %s2221_s22 }
 0x669   : > { %1710 = vrot.lane.b32.xlu0 %v1700_v31, %s2301_s17 }
 0x66b   : > { %1712 = vrot.lane.b32.xlu1 %v1701_v59, %s2301_s17  ;;  %s1885_s17 = sshll.u32 %s361_s16, 4  ;;  %s1886_s17 = int_to_ptr.vmem [resolvable:$true] %s1885_s17 }
 0x66c   : > { %s2217_s15 = scalar_lea.vmem %s1886_s17, 128  ;;  %p2224_p13 = scmp.lt.s32.totalorder %s1886_s17, %s2222_s22 }
 0x66d   : > { %1726 = vrot.lane.b32.xlu0 %v1700_v31, %s2302_s21  ;;  %p2218_p12 = scmp.ne.s32.totalorder %s1886_s17, %s2217_s15 }
 0x66f   : > { %1728 = vrot.lane.b32.xlu1 %v1701_v59, %s2302_s21  ;;  %p2219_p7 = pnand %p2218_p12, %p3512_p5 }
 0x671   : > { %1702 = vrot.lane.b32.xlu0 %v1700_v31, %s2303_s25  ;;  %p2220_p10 = pneg %p2219_p7 }
 0x673   : > { %1704 = vrot.lane.b32.xlu1 %v1701_v59, %s2303_s25 }
 0x675   : > { %1718 = vrot.lane.b32.xlu0 %v1700_v31, %s2304_s26 }
 0x677   : > { %1720 = vrot.lane.b32.xlu1 %v1701_v59, %s2304_s26  ;;  %s1883_s26 = scalar_lea.hbm %s3450_s8, %s2016_s14 }
 0x6cb   : > { %v1759_v35 = vpop.permute.xlu0 %1758 }
 0x6cd   : > { %v1761_v39 = vpop.permute.xlu1 %1760 }
 0x6ce   : > { %v1762_v10 = vsel %vm705_vm0, %v1759_v35, %v1761_v39  ;;  %v1763_v53 = vsel %vm705_vm0, %v1761_v39, %v1759_v35 }
 0x6cf   : > { %v1764_v51 = vmul.f32 %v1762_v10, %v3217_v19  ;;  %v1765_v33 = vmul.f32 %v1763_v53, %v3220_v40  ;;  %v1735_v34 = vpop.permute.xlu0 %1734 }
 0x6d1   : > { %v1798_v41 = vsel %vm367_vm1, %v1764_v51, %v3163_v11  ;;  %v1737_v60 = vpop.permute.xlu1 %1736  ;;  %v1799_v0 = vsel %vm367_vm1, %v1765_v33, %v3167_v6 }
 0x6d2   : > { %v1804_v25 = vpack.c.bf16 %v1798_v41, %v1798_v41  ;;  %v1738_v1 = vsel %vm585_vm4, %v1735_v34, %v1737_v60  ;;  %v1739_v42 = vsel %vm585_vm4, %v1737_v60, %v1735_v34  ;;  %v1805_v29 = vpack.c.bf16 %v1799_v0, %v1799_v0 }
 0x6d3   : > { %v1751_v16 = vpop.permute.xlu0 %1750  ;;  %v1740_v27 = vmul.f32 %v1738_v1, %v3253_v56  ;;  %v1741_v11 = vmul.f32 %v1739_v42, %v3256_v62 }
 0x6d4   : > { %v1814_v19 = vand.u32 %v1805_v29, %v2641_v38  ;;  %v1811_v40 = vand.u32 %v1804_v25, %v2641_v38 }
 0x6d5   : > { %v1753_v12 = vpop.permute.xlu1 %1752  ;;  %v1780_v54 = vrot.slane %v1740_v27, 4  ;;  %v1781_v38 = vrot.slane %v1741_v11, 4  ;;  %v2110_v11 = vld [vmem:[%s2493_s7] sm:$0xff]  ;;  %s2223_s7 = scalar_lea.vmem %s2222_s22, 256 }
 0x6d6   : > { %v1754_v6 = vsel %vm665_vm5, %v1751_v16, %v1753_v12  ;;  %v1755_v15 = vsel %vm665_vm5, %v1753_v12, %v1751_v16  ;;  %1826 = vmatprep.subr.bf16.mxu0 %v1814_v19  ;;  %p2225_p0 = scmp.lt.s32.totalorder %s2223_s7, %s2217_s15 }
 0x6d7   : > { %v1756_v4 = vmul.f32 %v1754_v6, %v3239_v50  ;;  %v1757_v45 = vmul.f32 %v1755_v15, %v3242_v26  ;;  %v1743_v46 = vpop.permute.xlu0 %1742  ;;  %1827 = vmatpush1.bf16.msra.mxu0 %v1811_v40  ;;  %v1794_v26 = vsel %vm367_vm1, %v1700_v31, %v1780_v54  ;;  %v1795_v13 = vsel %vm367_vm1, %v1701_v59, %v1781_v38  ;;  %v3511_v6 = vld [vmem:[#allocation24_spill] sm:$0xff] }
 0x6d8   : > { %p2226_p1 = por %p2225_p0, %p2224_p13 }
 0x6d9   : > { %v1745_v37 = vpop.permute.xlu1 %1744  ;;  %v1786_v20 = vrot.slane %v1756_v4, 4  ;;  %v1787_v44 = vrot.slane %v1757_v45, 4 }
 0x6da   : > { %v1746_v56 = vsel %vm625_vm6, %v1743_v46, %v1745_v37  ;;  %v1747_v62 = vsel %vm625_vm6, %v1745_v37, %v1743_v46  ;;  %p2227_p3 = pnand %p2226_p1, %p2220_p10 }
 0x6db   : > { %v1748_v47 = vmul.f32 %v1746_v56, %v3233_v58  ;;  %v1749_v49 = vmul.f32 %v1747_v62, %v3236_v2  ;;  %v1711_v50 = vpop.permute.xlu0 %1710 }
 0x6dd   : > { %v1796_v23 = vsel %vm367_vm1, %v1748_v47, %v1786_v20  ;;  %v1713_v24 = vpop.permute.xlu1 %1712  ;;  %v1797_v14 = vsel %vm367_vm1, %v1749_v49, %v1787_v44 }
 0x6de   : > { %v1803_v61 = vpack.c.bf16 %v1797_v14, %v1795_v13  ;;  %v1802_v57 = vpack.c.bf16 %v1796_v23, %v1794_v26  ;;  %v1714_v58 = vsel %vm465_vm7, %v1711_v50, %v1713_v24  ;;  %v1715_v2 = vsel %vm465_vm7, %v1713_v24, %v1711_v50 }
 0x6df   : > { %v1727_v5 = vpop.permute.xlu0 %1726  ;;  %v1716_v31 = vmul.f32 %v1715_v2, %v3301_v8  ;;  %v1717_v17 = vmul.f32 %v1714_v58, %v3304_v52 }
 0x6e0   : > { %1828 = vmatprep.subr.bf16.mxu0 %v1803_v61 }
 0x6e1   : > { %1829 = vmatpush1.bf16.msra.mxu0 %v1802_v57  ;;  %v1729_v43 = vpop.permute.xlu1 %1728  ;;  %v1768_v33 = vrot.slane %v1716_v31, 4  ;;  %v1769_v8 = vrot.slane %v1717_v17, 4 }
 0x6e2   : > { %v1730_v36 = vsel %vm545_vm8, %v1727_v5, %v1729_v43  ;;  %v1731_v30 = vsel %vm545_vm8, %v1729_v43, %v1727_v5 }
 0x6e3   : > { %v1703_v48 = vpop.permute.xlu0 %1702  ;;  %v1732_v32 = vmul.f32 %v1731_v30, %v3277_v28  ;;  %v1733_v35 = vmul.f32 %v1730_v36, %v3280_v18 }
 0x6e5   : > { %v1705_v21 = vpop.permute.xlu1 %1704  ;;  %v1774_v41 = vrot.slane %v1732_v32, 4  ;;  %v1775_v60 = vrot.slane %v1733_v35, 4 }
 0x6e6   : > { %v1706_v7 = vsel %vm426_vm9, %v1703_v48, %v1705_v21  ;;  %v1707_v59 = vsel %vm426_vm9, %v1705_v21, %v1703_v48 }
 0x6e7   : > { %v1708_v39 = vmul.f32 %v1707_v59, %v3295_v22  ;;  %v1709_v10 = vmul.f32 %v1706_v7, %v3298_v63  ;;  %v1719_v53 = vpop.permute.xlu0 %1718 }
 0x6e9   : > { %v1721_v51 = vpop.permute.xlu1 %1720  ;;  %v1790_v22 = vsel %vm367_vm1, %v1708_v39, %v1768_v33  ;;  %v1791_v0 = vsel %vm367_vm1, %v1709_v10, %v1769_v8 }
 0x6ea   : > { %v1722_v52 = vsel %vm505_vm10, %v1719_v53, %v1721_v51  ;;  %v1723_v34 = vsel %vm505_vm10, %v1721_v51, %v1719_v53 }
 0x6eb   : > { %v1724_v28 = vmul.f32 %v1723_v34, %v3271_v3  ;;  %v1725_v18 = vmul.f32 %v1722_v52, %v3274_v55 }
 0x6ed   : > { %v1792_v63 = vsel %vm367_vm1, %v1724_v28, %v1774_v41  ;;  %v1793_v25 = vsel %vm367_vm1, %v1725_v18, %v1775_v60 }
 0x6ee   : > { %v1801_v1 = vpack.c.bf16 %v1793_v25, %v1791_v0  ;;  %v1800_v42 = vpack.c.bf16 %v1792_v63, %v1790_v22 }
 0x6f0   : > { %1830 = vmatprep.subr.bf16.mxu0 %v1801_v1 }
 0x6f1   : > { %1831 = vmatpush1.bf16.msra.mxu0 %v1800_v42 }
 0x6f4   : > { %2009 = vmatmul.mubr.msk.bf16.vlgmr.msra.gmra.mxu0 %vm841_vm11, %v1806_v9 }
 0x7b4   : > { %v1850_v3 = vpop.f32.mrf.mxu0 }
 0x7b5   : > { %vm1857_vm0 = vcmp.gt.f32.partialorder %v1850_v3, 0.0  ;;  %v1859_v55 = vmul.f32 0.1, %v1850_v3 }
 0x7b6   : > { %v1852_v29 = vpop.f32.mrf.mxu0 }
 0x7b7   : > { %v1861_v16 = vsel %vm1857_vm0, %v1850_v3, %v1859_v55  ;;  %vm1858_vm1 = vcmp.gt.f32.partialorder %v1852_v29, 0.0  ;;  %v1860_v19 = vmul.f32 0.1, %v1852_v29 }
 0x7b8   : > { %v1854_v40 = vpop.f32.mrf.mxu0  ;;  %v1863_v12 = vadd.f32 %v2110_v11, %v1861_v16 }
 0x7b9   : > { %v1862_v27 = vsel %vm1858_vm1, %v1852_v29, %v1860_v19 }
 0x7ba   : > { %v1864_v15 = vadd.f32 %v1862_v27, %v3511_v6  ;;  %v1855_v4 = vpop.f32.mrf.mxu0 }
 0x7bc   : > { %v1867_v45 = vcombine.low %v1863_v12, %v1864_v15 }
 0x7be   : > { %1869 = vst [vmem:[%s361_s16] sm:$0xff] %v1867_v45 }
 0x7bf   : > { %2230 = shalt.err (!%p2227_p3)
}
 0x7c0   : > { %s2231_s18 = scalar_lea.hbm %s1883_s26, 128  ;;  %s2235_s10 = scalar_lea.hbm %s3450_s8, 256 }
 0x7c1   : > { %p2232_p4 = scmp.ne.s32.totalorder %s1883_s26, %s2231_s18  ;;  %p2236_p2 = scmp.lt.s32.totalorder %s1883_s26, %s3450_s8 }
 0x7c2   : > { %p2237_p6 = scmp.lt.s32.totalorder %s2235_s10, %s2231_s18 }
 0x7c3   : > { %p2233_p9 = pnand %p2232_p4, %p3512_p5 }
 0x7c4   : > { %p2238_p8 = por %p2237_p6, %p2236_p2 }
 0x7c5   : > { %p2234_p11 = pneg %p2233_p9 }
 0x7c7   : > { %p2239_p12 = pnand %p2238_p8, %p2234_p11 }
 0x7c9   : > { %2242 = shalt.err (!%p2239_p12)
}
 0x7ca   : > { %2031 = dma.vmem_to_hbm [thread:$0]  (%p3512_p5), %s1886_s17, 128, %s1883_s26, %s1871_s20  }
 0x7cb PF: > { %s1897_s14 = sand.u32 1, %s2277_s27   ;;  %p3513_p7 = scmp.ne.s32.totalorder %s3475_s12, 0 }
 0x7cc   : > { %p3514_p10 = scmp.ge.s32.totalorder %s2289_s30, 2  ;;  %s1898_s16 = scalar_lea.sflag [#allocation4], %s1897_s14 }
 0x7ce   : > { %p2048_p13 = pnand %p3514_p10, %p3513_p7 }
 0x7d0   : > { %p2049_p0 = pneg %p2048_p13 }
 0x7d2   : > { %2272 = dma.done.wait (%p2049_p0), %s1898_s16, 128  }
 0x7d3   : > { %2274 = vsyncadd (%p2049_p0), %s1898_s16, 4294967168  ;;  %p23_p1 = scmp.ge.s32.totalorder %s2441_s19, 4   ;;  %s3515_s27 = smov %s2281_s28 }
 0x7d4   : > { %s3516_s28 = smov %s2285_s29  ;;  %s3517_s29 = smov %s2451_s23 }
 0x7d5   : > { %s3518_s30 = smov %s2441_s19  ;;  %25 = sbr.rel (!%p23_p1) target bundleno = 11 (0xb), region = 117 }
 0x7da   :  { %1903 = vsyncpa [#allocation3], 1 }
 0x7db   :  { %1905 = vsyncpa [#allocation3 + $0x1], 1 }
 0x7dc   :  { %1906 = vsyncpa [#allocation6], 1 }
 0x7dd   :  { %1907 = vsyncpa [#allocation9], 1 }
 0x7de   :  { %1908 = vsyncpa [#allocation4], 1 }
 0x7df   :  { %1910 = vsyncpa [#allocation4 + $0x1], 1 }

</bundles_post_ra>
